<compile_context>
chip_gen: v5e
topology: v5e:2x2
jax: 0.10.0
libtpu: 0.0.40
codegen_flags: <defaults>
</compile_context>

<pallas_src>
import math
import functools

import jax
import jax.numpy as jnp
from jax.experimental import pallas as pl
from jax.experimental.pallas import tpu as pltpu

# ----------------------- module config (small synthetic) -----------------------
D_MODEL = 32
D_STATE = 8            # == num_queries Q (the ISSM state axis is the query axis)
D_DIST = 8
NHEADS = 4
NGROUPS = 1
EXPAND = 2
D_INNER = EXPAND * D_MODEL            # 64
HEADDIM = D_INNER // NHEADS           # 16
D_IN_KEY_PROJ = 2 * D_INNER + 2 * NGROUPS + NHEADS
DT_MIN, DT_MAX, DT_INIT_FLOOR = 1e-4, 0.1, 1e-4
A_INIT_RANGE = (1.0, 16.0)
EPS_RMS = 1e-5
EPS_LN = 1e-5


# ----------------------------- Pallas scan kernel -------------------------------
def _issm_bidir_scan_kernel(dA_ref, inc_ref, c_ref, dx_ref, init_ref,
                            y_ref, last_ref, yf_ref, yb_ref):
    # dA_ref/inc_ref/c_ref : (L, Q, N)   dx_ref : (L, N)   init_ref : (Q, N)
    # y_ref : (L, N) combined output     last_ref : (Q, N) combined final state
    # yf_ref / yb_ref : (L, N) VMEM scratch holding per-direction C-contractions
    seq_len = dA_ref.shape[0]

    s_init = init_ref[...]            # (Q, N) — exactly one (8,128) f32 vreg
    s_f = s_init                      # forward-scan state, lives in a vreg
    s_b = s_init                      # backward-scan state, independent chain

    # Fully unrolled loop with STATIC time indices.  The two direction chains
    # interleave: each step is two independent single-vreg FMAs (fills VALU),
    # plus a mul + sublane reduce (XLU) and a row store (vst) off the critical
    # path.  Row tb of yb_ref is indexed by ORIGINAL time, so no flip needed.
    for t in range(seq_len):
        tb = seq_len - 1 - t
        s_f = s_f * dA_ref[t] + inc_ref[t]
        s_b = s_b * dA_ref[tb] + inc_ref[tb]
        yf_ref[pl.ds(t, 1), :] = jnp.sum(s_f * c_ref[t], axis=0, keepdims=True)
        yb_ref[pl.ds(tb, 1), :] = jnp.sum(s_b * c_ref[tb], axis=0, keepdims=True)

    # Tiny epilogue (2 vregs): combine directions, add skip term, lane-dense store.
    y_ref[...] = 0.5 * (yf_ref[...] + yb_ref[...]) + dx_ref[...]
    last_ref[...] = 0.5 * (s_f + s_b)


def pallas_bidirectional_scan(x_bhlp, dt_bhlq, Bm, Cm, init_bhpq, A_vec, D_vec):
    """Bidirectional exact ISSM recurrence; returns combined y [B,H,L,P] and
    combined last state [B,H,P,Q] (0.5*(fwd+bwd), matching use_biscan=True)."""
    Bsz, H, L, P = x_bhlp.shape
    Q = dt_bhlq.shape[-1]
    N = Bsz * H * P                                           # 2*4*16 = 128 lanes

    # ---- state-independent precompute (plain JAX; XLA fuses these tiny ops) ----
    # TODO(synk): at large L, pass compact dA [L,Q,B*H] / Cm [L,Q,B] (or raw dt,A)
    # and broadcast / exp inside the kernel instead of materializing these.
    dA = jnp.exp(dt_bhlq * A_vec[None, :, None, None])                    # [B,H,L,Q]
    dA_all = jnp.broadcast_to(dA.transpose(2, 3, 0, 1)[..., None],
                              (L, Q, Bsz, H, P)).reshape(L, Q, N)
    dtB = dt_bhlq * Bm[:, None, :, :]                                     # [B,H,L,Q]
    inc_all = (x_bhlp[..., :, None] * dtB[..., None, :]                   # [B,H,L,P,Q]
               ).transpose(2, 4, 0, 1, 3).reshape(L, Q, N)
    C_all = jnp.broadcast_to(Cm.transpose(1, 2, 0)[:, :, :, None, None],
                             (L, Q, Bsz, H, P)).reshape(L, Q, N)
    dx_all = (D_vec[None, :, None, None] * x_bhlp).transpose(2, 0, 1, 3).reshape(L, N)
    init_all = init_bhpq.transpose(3, 0, 1, 2).reshape(Q, N)

    y, last = pl.pallas_call(
        _issm_bidir_scan_kernel,
        out_shape=(jax.ShapeDtypeStruct((L, N), jnp.float32),
                   jax.ShapeDtypeStruct((Q, N), jnp.float32)),
        grid=(1,),                                  # single fused invocation
        in_specs=[
            pl.BlockSpec((L, Q, N), lambda i: (0, 0, 0)),
            pl.BlockSpec((L, Q, N), lambda i: (0, 0, 0)),
            pl.BlockSpec((L, Q, N), lambda i: (0, 0, 0)),
            pl.BlockSpec((L, N),    lambda i: (0, 0)),
            pl.BlockSpec((Q, N),    lambda i: (0, 0)),
        ],
        out_specs=[
            pl.BlockSpec((L, N), lambda i: (0, 0)),
            pl.BlockSpec((Q, N), lambda i: (0, 0)),
        ],
        scratch_shapes=[pltpu.VMEM((L, N), jnp.float32),
                        pltpu.VMEM((L, N), jnp.float32)],
        compiler_params=pltpu.CompilerParams(
            dimension_semantics=("arbitrary",)),
    )(dA_all, inc_all, C_all, dx_all, init_all)

    y_bhlp = y.reshape(L, Bsz, H, P).transpose(1, 2, 0, 3)                 # [B,H,L,P]
    last_bhpq = last.reshape(Q, Bsz, H, P).transpose(1, 2, 3, 0)           # [B,H,P,Q]
    return y_bhlp, last_bhpq


# --------------------------- pure-JAX reference scan ----------------------------
def reference_biscan(x_bhlp, dt_bhlq, Bm, Cm, init_bhpq, A_vec, D_vec):
    def one_dir(x, dt, Bm_, Cm_):
        def step(S, inp):
            x_t, dt_t, b_t, c_t = inp                 # [B,H,P],[B,H,Q],[B,Q],[B,Q]
            dA = jnp.exp(dt_t * A_vec[None, :, None])                         # [B,H,Q]
            inc = x_t[..., :, None] * (dt_t * b_t[:, None, :])[..., None, :]  # [B,H,P,Q]
            S = S * dA[:, :, None, :] + inc
            y = jnp.sum(S * c_t[:, None, None, :], axis=-1) + D_vec[None, :, None] * x_t
            return S, y
        xs = (jnp.moveaxis(x, 2, 0), jnp.moveaxis(dt, 2, 0),
              jnp.moveaxis(Bm_, 1, 0), jnp.moveaxis(Cm_, 1, 0))
        S_last, ys = jax.lax.scan(step, init_bhpq, xs)
        return jnp.moveaxis(ys, 0, 2), S_last

    y_f, last_f = one_dir(x_bhlp, dt_bhlq, Bm, Cm)
    y_b, last_b = one_dir(jnp.flip(x_bhlp, 2), jnp.flip(dt_bhlq, 2),
                          jnp.flip(Bm, 1), jnp.flip(Cm, 1))
    y = 0.5 * (y_f + jnp.flip(y_b, 2))
    last = 0.5 * (last_f + last_b)
    return y, last


# --------------------------------- forward --------------------------------------
def multihead_2d_issm_forward(params, in_key, in_query, dist, scan_fn):
    # in_key: [B, L, D], in_query: [B, Q, D], dist: [B, L, Q, M]; mask/key_pos = None
    Bsz, L, _ = in_key.shape
    Q = in_query.shape[1]

    # --- projections / bias algebra: plain JAX, fused by XLA (KB-sized) ---
    zxbcdt = in_key @ params["w_key_proj"]                         # [B,L,2Di+2g+H]
    z = zxbcdt[..., :D_INNER]
    x = zxbcdt[..., D_INNER:2 * D_INNER]
    b_bias = zxbcdt[..., 2 * D_INNER:2 * D_INNER + NGROUPS]
    c_bias = zxbcdt[..., 2 * D_INNER + NGROUPS:2 * D_INNER + 2 * NGROUPS]
    dt_bias_seq = zxbcdt[..., 2 * D_INNER + 2 * NGROUPS:]          # [B,L,H]

    init = in_query @ params["w_query_proj"]                       # [B,Q,Di]
    init_bhpq = init.reshape(Bsz, Q, NHEADS, HEADDIM).transpose(0, 2, 3, 1)  # b h p q

    A_vec = -jnp.exp(params["A_log"])       # per-head scalar (repeat over d_state)
    D_vec = params["D"]

    # merged bc_proj + dt_proj: single matmul over dist
    w_bcdt = jnp.concatenate([params["w_bc_proj"], params["w_dt_proj"]], axis=1)
    bcdt = dist @ w_bcdt                                           # [B,L,Q,2g+H]
    Bm = (bcdt[..., :NGROUPS] + b_bias[:, :, None, :])[..., 0]     # [B,L,Q]
    Cm = (bcdt[..., NGROUPS:2 * NGROUPS] + c_bias[:, :, None, :])[..., 0]  # [B,L,Q]
    dt_base = bcdt[..., 2 * NGROUPS:]                              # [B,L,Q,H]
    dt = jax.nn.softplus(dt_base.transpose(0, 1, 3, 2)
                         + dt_bias_seq[..., None]
                         + params["dt_bias"][None, None, :, None])  # [B,L,H,Q]
    # TODO(synk): optional `mask`/`key_pos` arguments are not modelled (None path only).

    x_bhlp = x.reshape(Bsz, L, NHEADS, HEADDIM).transpose(0, 2, 1, 3)   # [B,H,L,P]
    dt_bhlq = dt.transpose(0, 2, 1, 3)                                  # [B,H,L,Q]

    # --- bidirectional ISSM scan (Pallas kernel, or JAX reference) ---
    y, last = scan_fn(x_bhlp, dt_bhlq, Bm, Cm, init_bhpq, A_vec, D_vec)
    # y: [B,H,L,P] (already 0.5*(fwd + bwd-unflipped)), last: [B,H,P,Q]

    # key branch: RMSNormGated (gate-before-norm) + out_key_proj
    key_seq = y.transpose(0, 2, 1, 3).reshape(Bsz, L, D_INNER)          # b l (h p)
    gated = key_seq * jax.nn.silu(z)
    key_n = gated * jax.lax.rsqrt(jnp.mean(gated * gated, axis=-1, keepdims=True)
                                  + EPS_RMS) * params["key_norm_w"]
    out_key = key_n @ params["w_out_key"]                               # [B,L,D]

    # query branch: LayerNorm(last states) + out_query_proj
    qs = last.transpose(0, 3, 1, 2).reshape(Bsz, Q, D_INNER)            # b q (h p)
    mu = jnp.mean(qs, axis=-1, keepdims=True)
    var = jnp.mean((qs - mu) ** 2, axis=-1, keepdims=True)
    qs_ln = (qs - mu) * jax.lax.rsqrt(var + EPS_LN) * params["ln_w"] + params["ln_b"]
    out_query = qs_ln @ params["w_out_query"]                           # [B,Q,D]
    return out_key, out_query


# -------------------------- deterministic parameters ----------------------------
def init_params(key):
    ks = jax.random.split(key, 8)

    def linear_w(k, fan_in, fan_out):
        bound = 1.0 / math.sqrt(fan_in)
        return jax.random.uniform(k, (fan_in, fan_out), jnp.float32, -bound, bound)

    params = {
        "w_key_proj": linear_w(ks[0], D_MODEL, D_IN_KEY_PROJ),
        "w_query_proj": linear_w(ks[1], D_MODEL, D_INNER),
        "w_bc_proj": linear_w(ks[2], D_DIST, 2 * NGROUPS),
        "w_dt_proj": linear_w(ks[3], D_DIST, NHEADS),
        "w_out_key": linear_w(ks[6], D_INNER, D_MODEL),
        "w_out_query": linear_w(ks[7], D_INNER, D_MODEL),
        "D": jnp.ones((NHEADS,), jnp.float32),
        "key_norm_w": jnp.ones((D_INNER,), jnp.float32),
        "ln_w": jnp.ones((D_INNER,), jnp.float32),
        "ln_b": jnp.zeros((D_INNER,), jnp.float32),
    }
    dt0 = jnp.exp(jax.random.uniform(ks[4], (NHEADS,), jnp.float32)
                  * (math.log(DT_MAX) - math.log(DT_MIN)) + math.log(DT_MIN))
    dt0 = jnp.maximum(dt0, DT_INIT_FLOOR)
    params["dt_bias"] = dt0 + jnp.log(-jnp.expm1(-dt0))
    params["A_log"] = jnp.log(jax.random.uniform(
        ks[5], (NHEADS,), jnp.float32, A_INIT_RANGE[0], A_INIT_RANGE[1]))
    return params


# ------------------------------------ main ---------------------------------------
if __name__ == "__main__":
    root = jax.random.PRNGKey(0)
    kp, k1, k2, k3 = jax.random.split(root, 4)
    params = init_params(kp)

    B, L, Q = 2, 16, D_STATE
    in_key = jax.random.normal(k1, (B, L, D_MODEL), jnp.float32)
    in_query = jax.random.normal(k2, (B, Q, D_MODEL), jnp.float32)
    dist = jax.random.normal(k3, (B, L, Q, D_DIST), jnp.float32)

    fwd = jax.jit(functools.partial(multihead_2d_issm_forward,
                                    scan_fn=pallas_bidirectional_scan))
    out_key, out_query = fwd(params, in_key, in_query, dist)
    jax.block_until_ready((out_key, out_query))

    # correctness check against a pure-JAX reference of the full forward
    ref_fwd = jax.jit(functools.partial(multihead_2d_issm_forward,
                                        scan_fn=reference_biscan))
    ok_ref, oq_ref = ref_fwd(params, in_key, in_query, dist)
    jax.block_until_ready((ok_ref, oq_ref))

    assert out_key.shape == (B, L, D_MODEL) and out_query.shape == (B, Q, D_MODEL)
    assert bool(jnp.all(jnp.isfinite(out_key))) and bool(jnp.all(jnp.isfinite(out_query)))
    assert bool(jnp.allclose(out_key, ok_ref, atol=1e-3, rtol=1e-3))
    assert bool(jnp.allclose(out_query, oq_ref, atol=1e-3, rtol=1e-3))

    print("KERNEL_OK")
</pallas_src>

<mosaic_0001>
module attributes {stable_mosaic.version = 11 : i64} {
  func.func @_issm_bidir_scan_kernel(%arg0: i32, %arg1: memref<16x8x128xf32, #tpu.memory_space<vmem>>, %arg2: memref<16x8x128xf32, #tpu.memory_space<vmem>>, %arg3: memref<16x8x128xf32, #tpu.memory_space<vmem>>, %arg4: memref<16x128xf32, #tpu.memory_space<vmem>>, %arg5: memref<8x128xf32, #tpu.memory_space<vmem>>, %arg6: memref<16x128xf32, #tpu.memory_space<vmem>>, %arg7: memref<8x128xf32, #tpu.memory_space<vmem>>, %arg8: memref<16x128xf32, #tpu.memory_space<vmem>>, %arg9: memref<16x128xf32, #tpu.memory_space<vmem>>) attributes {dimension_semantics = [#tpu.dimension_semantics<arbitrary>], iteration_bounds = array<i64: 1>, scalar_prefetch = 0 : i64, scratch_operands = 2 : i64, tpu.core_type = #tpu.core_type<tc>, window_params = [{pipeline_mode = #tpu.pipeline_mode<synchronous>, transform_indices = @transform_0, window_bounds = array<i64: 16, 8, 128>}, {pipeline_mode = #tpu.pipeline_mode<synchronous>, transform_indices = @transform_1, window_bounds = array<i64: 16, 8, 128>}, {pipeline_mode = #tpu.pipeline_mode<synchronous>, transform_indices = @transform_2, window_bounds = array<i64: 16, 8, 128>}, {pipeline_mode = #tpu.pipeline_mode<synchronous>, transform_indices = @transform_3, window_bounds = array<i64: 16, 128>}, {pipeline_mode = #tpu.pipeline_mode<synchronous>, transform_indices = @transform_4, window_bounds = array<i64: 8, 128>}, {pipeline_mode = #tpu.pipeline_mode<synchronous>, transform_indices = @transform_5, window_bounds = array<i64: 16, 128>}, {pipeline_mode = #tpu.pipeline_mode<synchronous>, transform_indices = @transform_6, window_bounds = array<i64: 8, 128>}]} {
    %c0 = arith.constant 0 : index
    %c0_0 = arith.constant 0 : index
    %0 = vector.load %arg5[%c0, %c0_0] : memref<8x128xf32, #tpu.memory_space<vmem>>, vector<8x128xf32>
    %c0_1 = arith.constant 0 : index
    %c0_2 = arith.constant 0 : index
    %c0_3 = arith.constant 0 : index
    %1 = vector.load %arg1[%c0_1, %c0_2, %c0_3] : memref<16x8x128xf32, #tpu.memory_space<vmem>>, vector<1x8x128xf32>
    %2 = vector.shape_cast %1 : vector<1x8x128xf32> to vector<8x128xf32>
    %3 = arith.mulf %0, %2 : vector<8x128xf32>
    %c0_4 = arith.constant 0 : index
    %c0_5 = arith.constant 0 : index
    %c0_6 = arith.constant 0 : index
    %4 = vector.load %arg2[%c0_4, %c0_5, %c0_6] : memref<16x8x128xf32, #tpu.memory_space<vmem>>, vector<1x8x128xf32>
    %5 = vector.shape_cast %4 : vector<1x8x128xf32> to vector<8x128xf32>
    %6 = arith.addf %3, %5 : vector<8x128xf32>
    %c15 = arith.constant 15 : index
    %c0_7 = arith.constant 0 : index
    %c0_8 = arith.constant 0 : index
    %7 = vector.load %arg1[%c15, %c0_7, %c0_8] : memref<16x8x128xf32, #tpu.memory_space<vmem>>, vector<1x8x128xf32>
    %8 = vector.shape_cast %7 : vector<1x8x128xf32> to vector<8x128xf32>
    %9 = arith.mulf %0, %8 : vector<8x128xf32>
    %c15_9 = arith.constant 15 : index
    %c0_10 = arith.constant 0 : index
    %c0_11 = arith.constant 0 : index
    %10 = vector.load %arg2[%c15_9, %c0_10, %c0_11] : memref<16x8x128xf32, #tpu.memory_space<vmem>>, vector<1x8x128xf32>
    %11 = vector.shape_cast %10 : vector<1x8x128xf32> to vector<8x128xf32>
    %12 = arith.addf %9, %11 : vector<8x128xf32>
    %c0_12 = arith.constant 0 : index
    %c0_13 = arith.constant 0 : index
    %c0_14 = arith.constant 0 : index
    %13 = vector.load %arg3[%c0_12, %c0_13, %c0_14] : memref<16x8x128xf32, #tpu.memory_space<vmem>>, vector<1x8x128xf32>
    %14 = vector.shape_cast %13 : vector<1x8x128xf32> to vector<8x128xf32>
    %15 = arith.mulf %6, %14 : vector<8x128xf32>
    %cst = arith.constant dense<0.000000e+00> : vector<128xf32>
    %16 = vector.multi_reduction <add>, %15, %cst [0] : vector<8x128xf32> to vector<128xf32>
    %17 = vector.shape_cast %16 : vector<128xf32> to vector<1x128xf32>
    %c0_15 = arith.constant 0 : index
    %c0_16 = arith.constant 0 : index
    %18 = vector.load %arg8[%c0_15, %c0_16] : memref<16x128xf32, #tpu.memory_space<vmem>>, vector<1x128xf32>
    tpu.vector_store %arg8[%c0_15, %c0_16], %17 {strides = array<i32>} : memref<16x128xf32, #tpu.memory_space<vmem>>, vector<1x128xf32>,
    %c15_17 = arith.constant 15 : index
    %c0_18 = arith.constant 0 : index
    %c0_19 = arith.constant 0 : index
    %19 = vector.load %arg3[%c15_17, %c0_18, %c0_19] : memref<16x8x128xf32, #tpu.memory_space<vmem>>, vector<1x8x128xf32>
    %20 = vector.shape_cast %19 : vector<1x8x128xf32> to vector<8x128xf32>
    %21 = arith.mulf %12, %20 : vector<8x128xf32>
    %cst_20 = arith.constant dense<0.000000e+00> : vector<128xf32>
    %22 = vector.multi_reduction <add>, %21, %cst_20 [0] : vector<8x128xf32> to vector<128xf32>
    %23 = vector.shape_cast %22 : vector<128xf32> to vector<1x128xf32>
    %c15_21 = arith.constant 15 : index
    %c0_22 = arith.constant 0 : index
    %24 = vector.load %arg9[%c15_21, %c0_22] : memref<16x128xf32, #tpu.memory_space<vmem>>, vector<1x128xf32>
    tpu.vector_store %arg9[%c15_21, %c0_22], %23 {strides = array<i32>} : memref<16x128xf32, #tpu.memory_space<vmem>>, vector<1x128xf32>,
    %c1 = arith.constant 1 : index
    %c0_23 = arith.constant 0 : index
    %c0_24 = arith.constant 0 : index
    %25 = vector.load %arg1[%c1, %c0_23, %c0_24] : memref<16x8x128xf32, #tpu.memory_space<vmem>>, vector<1x8x128xf32>
    %26 = vector.shape_cast %25 : vector<1x8x128xf32> to vector<8x128xf32>
    %27 = arith.mulf %6, %26 : vector<8x128xf32>
    %c1_25 = arith.constant 1 : index
    %c0_26 = arith.constant 0 : index
    %c0_27 = arith.constant 0 : index
    %28 = vector.load %arg2[%c1_25, %c0_26, %c0_27] : memref<16x8x128xf32, #tpu.memory_space<vmem>>, vector<1x8x128xf32>
    %29 = vector.shape_cast %28 : vector<1x8x128xf32> to vector<8x128xf32>
    %30 = arith.addf %27, %29 : vector<8x128xf32>
    %c14 = arith.constant 14 : index
    %c0_28 = arith.constant 0 : index
    %c0_29 = arith.constant 0 : index
    %31 = vector.load %arg1[%c14, %c0_28, %c0_29] : memref<16x8x128xf32, #tpu.memory_space<vmem>>, vector<1x8x128xf32>
    %32 = vector.shape_cast %31 : vector<1x8x128xf32> to vector<8x128xf32>
    %33 = arith.mulf %12, %32 : vector<8x128xf32>
    %c14_30 = arith.constant 14 : index
    %c0_31 = arith.constant 0 : index
    %c0_32 = arith.constant 0 : index
    %34 = vector.load %arg2[%c14_30, %c0_31, %c0_32] : memref<16x8x128xf32, #tpu.memory_space<vmem>>, vector<1x8x128xf32>
    %35 = vector.shape_cast %34 : vector<1x8x128xf32> to vector<8x128xf32>
    %36 = arith.addf %33, %35 : vector<8x128xf32>
    %c1_33 = arith.constant 1 : index
    %c0_34 = arith.constant 0 : index
    %c0_35 = arith.constant 0 : index
    %37 = vector.load %arg3[%c1_33, %c0_34, %c0_35] : memref<16x8x128xf32, #tpu.memory_space<vmem>>, vector<1x8x128xf32>
    %38 = vector.shape_cast %37 : vector<1x8x128xf32> to vector<8x128xf32>
    %39 = arith.mulf %30, %38 : vector<8x128xf32>
    %cst_36 = arith.constant dense<0.000000e+00> : vector<128xf32>
    %40 = vector.multi_reduction <add>, %39, %cst_36 [0] : vector<8x128xf32> to vector<128xf32>
    %41 = vector.shape_cast %40 : vector<128xf32> to vector<1x128xf32>
    %c1_37 = arith.constant 1 : index
    %c0_38 = arith.constant 0 : index
    %42 = vector.load %arg8[%c1_37, %c0_38] : memref<16x128xf32, #tpu.memory_space<vmem>>, vector<1x128xf32>
    tpu.vector_store %arg8[%c1_37, %c0_38], %41 {strides = array<i32>} : memref<16x128xf32, #tpu.memory_space<vmem>>, vector<1x128xf32>,
    %c14_39 = arith.constant 14 : index
    %c0_40 = arith.constant 0 : index
    %c0_41 = arith.constant 0 : index
    %43 = vector.load %arg3[%c14_39, %c0_40, %c0_41] : memref<16x8x128xf32, #tpu.memory_space<vmem>>, vector<1x8x128xf32>
    %44 = vector.shape_cast %43 : vector<1x8x128xf32> to vector<8x128xf32>
    %45 = arith.mulf %36, %44 : vector<8x128xf32>
    %cst_42 = arith.constant dense<0.000000e+00> : vector<128xf32>
    %46 = vector.multi_reduction <add>, %45, %cst_42 [0] : vector<8x128xf32> to vector<128xf32>
    %47 = vector.shape_cast %46 : vector<128xf32> to vector<1x128xf32>
    %c14_43 = arith.constant 14 : index
    %c0_44 = arith.constant 0 : index
    %48 = vector.load %arg9[%c14_43, %c0_44] : memref<16x128xf32, #tpu.memory_space<vmem>>, vector<1x128xf32>
    tpu.vector_store %arg9[%c14_43, %c0_44], %47 {strides = array<i32>} : memref<16x128xf32, #tpu.memory_space<vmem>>, vector<1x128xf32>,
    %c2 = arith.constant 2 : index
    %c0_45 = arith.constant 0 : index
    %c0_46 = arith.constant 0 : index
    %49 = vector.load %arg1[%c2, %c0_45, %c0_46] : memref<16x8x128xf32, #tpu.memory_space<vmem>>, vector<1x8x128xf32>
    %50 = vector.shape_cast %49 : vector<1x8x128xf32> to vector<8x128xf32>
    %51 = arith.mulf %30, %50 : vector<8x128xf32>
    %c2_47 = arith.constant 2 : index
    %c0_48 = arith.constant 0 : index
    %c0_49 = arith.constant 0 : index
    %52 = vector.load %arg2[%c2_47, %c0_48, %c0_49] : memref<16x8x128xf32, #tpu.memory_space<vmem>>, vector<1x8x128xf32>
    %53 = vector.shape_cast %52 : vector<1x8x128xf32> to vector<8x128xf32>
    %54 = arith.addf %51, %53 : vector<8x128xf32>
    %c13 = arith.constant 13 : index
    %c0_50 = arith.constant 0 : index
    %c0_51 = arith.constant 0 : index
    %55 = vector.load %arg1[%c13, %c0_50, %c0_51] : memref<16x8x128xf32, #tpu.memory_space<vmem>>, vector<1x8x128xf32>
    %56 = vector.shape_cast %55 : vector<1x8x128xf32> to vector<8x128xf32>
    %57 = arith.mulf %36, %56 : vector<8x128xf32>
    %c13_52 = arith.constant 13 : index
    %c0_53 = arith.constant 0 : index
    %c0_54 = arith.constant 0 : index
    %58 = vector.load %arg2[%c13_52, %c0_53, %c0_54] : memref<16x8x128xf32, #tpu.memory_space<vmem>>, vector<1x8x128xf32>
    %59 = vector.shape_cast %58 : vector<1x8x128xf32> to vector<8x128xf32>
    %60 = arith.addf %57, %59 : vector<8x128xf32>
    %c2_55 = arith.constant 2 : index
    %c0_56 = arith.constant 0 : index
    %c0_57 = arith.constant 0 : index
    %61 = vector.load %arg3[%c2_55, %c0_56, %c0_57] : memref<16x8x128xf32, #tpu.memory_space<vmem>>, vector<1x8x128xf32>
    %62 = vector.shape_cast %61 : vector<1x8x128xf32> to vector<8x128xf32>
    %63 = arith.mulf %54, %62 : vector<8x128xf32>
    %cst_58 = arith.constant dense<0.000000e+00> : vector<128xf32>
    %64 = vector.multi_reduction <add>, %63, %cst_58 [0] : vector<8x128xf32> to vector<128xf32>
    %65 = vector.shape_cast %64 : vector<128xf32> to vector<1x128xf32>
    %c2_59 = arith.constant 2 : index
    %c0_60 = arith.constant 0 : index
    %66 = vector.load %arg8[%c2_59, %c0_60] : memref<16x128xf32, #tpu.memory_space<vmem>>, vector<1x128xf32>
    tpu.vector_store %arg8[%c2_59, %c0_60], %65 {strides = array<i32>} : memref<16x128xf32, #tpu.memory_space<vmem>>, vector<1x128xf32>,
    %c13_61 = arith.constant 13 : index
    %c0_62 = arith.constant 0 : index
    %c0_63 = arith.constant 0 : index
    %67 = vector.load %arg3[%c13_61, %c0_62, %c0_63] : memref<16x8x128xf32, #tpu.memory_space<vmem>>, vector<1x8x128xf32>
    %68 = vector.shape_cast %67 : vector<1x8x128xf32> to vector<8x128xf32>
    %69 = arith.mulf %60, %68 : vector<8x128xf32>
    %cst_64 = arith.constant dense<0.000000e+00> : vector<128xf32>
    %70 = vector.multi_reduction <add>, %69, %cst_64 [0] : vector<8x128xf32> to vector<128xf32>
    %71 = vector.shape_cast %70 : vector<128xf32> to vector<1x128xf32>
    %c13_65 = arith.constant 13 : index
    %c0_66 = arith.constant 0 : index
    %72 = vector.load %arg9[%c13_65, %c0_66] : memref<16x128xf32, #tpu.memory_space<vmem>>, vector<1x128xf32>
    tpu.vector_store %arg9[%c13_65, %c0_66], %71 {strides = array<i32>} : memref<16x128xf32, #tpu.memory_space<vmem>>, vector<1x128xf32>,
    %c3 = arith.constant 3 : index
    %c0_67 = arith.constant 0 : index
    %c0_68 = arith.constant 0 : index
    %73 = vector.load %arg1[%c3, %c0_67, %c0_68] : memref<16x8x128xf32, #tpu.memory_space<vmem>>, vector<1x8x128xf32>
    %74 = vector.shape_cast %73 : vector<1x8x128xf32> to vector<8x128xf32>
    %75 = arith.mulf %54, %74 : vector<8x128xf32>
    %c3_69 = arith.constant 3 : index
    %c0_70 = arith.constant 0 : index
    %c0_71 = arith.constant 0 : index
    %76 = vector.load %arg2[%c3_69, %c0_70, %c0_71] : memref<16x8x128xf32, #tpu.memory_space<vmem>>, vector<1x8x128xf32>
    %77 = vector.shape_cast %76 : vector<1x8x128xf32> to vector<8x128xf32>
    %78 = arith.addf %75, %77 : vector<8x128xf32>
    %c12 = arith.constant 12 : index
    %c0_72 = arith.constant 0 : index
    %c0_73 = arith.constant 0 : index
    %79 = vector.load %arg1[%c12, %c0_72, %c0_73] : memref<16x8x128xf32, #tpu.memory_space<vmem>>, vector<1x8x128xf32>
    %80 = vector.shape_cast %79 : vector<1x8x128xf32> to vector<8x128xf32>
    %81 = arith.mulf %60, %80 : vector<8x128xf32>
    %c12_74 = arith.constant 12 : index
    %c0_75 = arith.constant 0 : index
    %c0_76 = arith.constant 0 : index
    %82 = vector.load %arg2[%c12_74, %c0_75, %c0_76] : memref<16x8x128xf32, #tpu.memory_space<vmem>>, vector<1x8x128xf32>
    %83 = vector.shape_cast %82 : vector<1x8x128xf32> to vector<8x128xf32>
    %84 = arith.addf %81, %83 : vector<8x128xf32>
    %c3_77 = arith.constant 3 : index
    %c0_78 = arith.constant 0 : index
    %c0_79 = arith.constant 0 : index
    %85 = vector.load %arg3[%c3_77, %c0_78, %c0_79] : memref<16x8x128xf32, #tpu.memory_space<vmem>>, vector<1x8x128xf32>
    %86 = vector.shape_cast %85 : vector<1x8x128xf32> to vector<8x128xf32>
    %87 = arith.mulf %78, %86 : vector<8x128xf32>
    %cst_80 = arith.constant dense<0.000000e+00> : vector<128xf32>
    %88 = vector.multi_reduction <add>, %87, %cst_80 [0] : vector<8x128xf32> to vector<128xf32>
    %89 = vector.shape_cast %88 : vector<128xf32> to vector<1x128xf32>
    %c3_81 = arith.constant 3 : index
    %c0_82 = arith.constant 0 : index
    %90 = vector.load %arg8[%c3_81, %c0_82] : memref<16x128xf32, #tpu.memory_space<vmem>>, vector<1x128xf32>
    tpu.vector_store %arg8[%c3_81, %c0_82], %89 {strides = array<i32>} : memref<16x128xf32, #tpu.memory_space<vmem>>, vector<1x128xf32>,
    %c12_83 = arith.constant 12 : index
    %c0_84 = arith.constant 0 : index
    %c0_85 = arith.constant 0 : index
    %91 = vector.load %arg3[%c12_83, %c0_84, %c0_85] : memref<16x8x128xf32, #tpu.memory_space<vmem>>, vector<1x8x128xf32>
    %92 = vector.shape_cast %91 : vector<1x8x128xf32> to vector<8x128xf32>
    %93 = arith.mulf %84, %92 : vector<8x128xf32>
    %cst_86 = arith.constant dense<0.000000e+00> : vector<128xf32>
    %94 = vector.multi_reduction <add>, %93, %cst_86 [0] : vector<8x128xf32> to vector<128xf32>
    %95 = vector.shape_cast %94 : vector<128xf32> to vector<1x128xf32>
    %c12_87 = arith.constant 12 : index
    %c0_88 = arith.constant 0 : index
    %96 = vector.load %arg9[%c12_87, %c0_88] : memref<16x128xf32, #tpu.memory_space<vmem>>, vector<1x128xf32>
    tpu.vector_store %arg9[%c12_87, %c0_88], %95 {strides = array<i32>} : memref<16x128xf32, #tpu.memory_space<vmem>>, vector<1x128xf32>,
    %c4 = arith.constant 4 : index
    %c0_89 = arith.constant 0 : index
    %c0_90 = arith.constant 0 : index
    %97 = vector.load %arg1[%c4, %c0_89, %c0_90] : memref<16x8x128xf32, #tpu.memory_space<vmem>>, vector<1x8x128xf32>
    %98 = vector.shape_cast %97 : vector<1x8x128xf32> to vector<8x128xf32>
    %99 = arith.mulf %78, %98 : vector<8x128xf32>
    %c4_91 = arith.constant 4 : index
    %c0_92 = arith.constant 0 : index
    %c0_93 = arith.constant 0 : index
    %100 = vector.load %arg2[%c4_91, %c0_92, %c0_93] : memref<16x8x128xf32, #tpu.memory_space<vmem>>, vector<1x8x128xf32>
    %101 = vector.shape_cast %100 : vector<1x8x128xf32> to vector<8x128xf32>
    %102 = arith.addf %99, %101 : vector<8x128xf32>
    %c11 = arith.constant 11 : index
    %c0_94 = arith.constant 0 : index
    %c0_95 = arith.constant 0 : index
    %103 = vector.load %arg1[%c11, %c0_94, %c0_95] : memref<16x8x128xf32, #tpu.memory_space<vmem>>, vector<1x8x128xf32>
    %104 = vector.shape_cast %103 : vector<1x8x128xf32> to vector<8x128xf32>
    %105 = arith.mulf %84, %104 : vector<8x128xf32>
    %c11_96 = arith.constant 11 : index
    %c0_97 = arith.constant 0 : index
    %c0_98 = arith.constant 0 : index
    %106 = vector.load %arg2[%c11_96, %c0_97, %c0_98] : memref<16x8x128xf32, #tpu.memory_space<vmem>>, vector<1x8x128xf32>
    %107 = vector.shape_cast %106 : vector<1x8x128xf32> to vector<8x128xf32>
    %108 = arith.addf %105, %107 : vector<8x128xf32>
    %c4_99 = arith.constant 4 : index
    %c0_100 = arith.constant 0 : index
    %c0_101 = arith.constant 0 : index
    %109 = vector.load %arg3[%c4_99, %c0_100, %c0_101] : memref<16x8x128xf32, #tpu.memory_space<vmem>>, vector<1x8x128xf32>
    %110 = vector.shape_cast %109 : vector<1x8x128xf32> to vector<8x128xf32>
    %111 = arith.mulf %102, %110 : vector<8x128xf32>
    %cst_102 = arith.constant dense<0.000000e+00> : vector<128xf32>
    %112 = vector.multi_reduction <add>, %111, %cst_102 [0] : vector<8x128xf32> to vector<128xf32>
    %113 = vector.shape_cast %112 : vector<128xf32> to vector<1x128xf32>
    %c4_103 = arith.constant 4 : index
    %c0_104 = arith.constant 0 : index
    %114 = vector.load %arg8[%c4_103, %c0_104] : memref<16x128xf32, #tpu.memory_space<vmem>>, vector<1x128xf32>
    tpu.vector_store %arg8[%c4_103, %c0_104], %113 {strides = array<i32>} : memref<16x128xf32, #tpu.memory_space<vmem>>, vector<1x128xf32>,
    %c11_105 = arith.constant 11 : index
    %c0_106 = arith.constant 0 : index
    %c0_107 = arith.constant 0 : index
    %115 = vector.load %arg3[%c11_105, %c0_106, %c0_107] : memref<16x8x128xf32, #tpu.memory_space<vmem>>, vector<1x8x128xf32>
    %116 = vector.shape_cast %115 : vector<1x8x128xf32> to vector<8x128xf32>
    %117 = arith.mulf %108, %116 : vector<8x128xf32>
    %cst_108 = arith.constant dense<0.000000e+00> : vector<128xf32>
    %118 = vector.multi_reduction <add>, %117, %cst_108 [0] : vector<8x128xf32> to vector<128xf32>
    %119 = vector.shape_cast %118 : vector<128xf32> to vector<1x128xf32>
    %c11_109 = arith.constant 11 : index
    %c0_110 = arith.constant 0 : index
    %120 = vector.load %arg9[%c11_109, %c0_110] : memref<16x128xf32, #tpu.memory_space<vmem>>, vector<1x128xf32>
    tpu.vector_store %arg9[%c11_109, %c0_110], %119 {strides = array<i32>} : memref<16x128xf32, #tpu.memory_space<vmem>>, vector<1x128xf32>,
    %c5 = arith.constant 5 : index
    %c0_111 = arith.constant 0 : index
    %c0_112 = arith.constant 0 : index
    %121 = vector.load %arg1[%c5, %c0_111, %c0_112] : memref<16x8x128xf32, #tpu.memory_space<vmem>>, vector<1x8x128xf32>
    %122 = vector.shape_cast %121 : vector<1x8x128xf32> to vector<8x128xf32>
    %123 = arith.mulf %102, %122 : vector<8x128xf32>
    %c5_113 = arith.constant 5 : index
    %c0_114 = arith.constant 0 : index
    %c0_115 = arith.constant 0 : index
    %124 = vector.load %arg2[%c5_113, %c0_114, %c0_115] : memref<16x8x128xf32, #tpu.memory_space<vmem>>, vector<1x8x128xf32>
    %125 = vector.shape_cast %124 : vector<1x8x128xf32> to vector<8x128xf32>
    %126 = arith.addf %123, %125 : vector<8x128xf32>
    %c10 = arith.constant 10 : index
    %c0_116 = arith.constant 0 : index
    %c0_117 = arith.constant 0 : index
    %127 = vector.load %arg1[%c10, %c0_116, %c0_117] : memref<16x8x128xf32, #tpu.memory_space<vmem>>, vector<1x8x128xf32>
    %128 = vector.shape_cast %127 : vector<1x8x128xf32> to vector<8x128xf32>
    %129 = arith.mulf %108, %128 : vector<8x128xf32>
    %c10_118 = arith.constant 10 : index
    %c0_119 = arith.constant 0 : index
    %c0_120 = arith.constant 0 : index
    %130 = vector.load %arg2[%c10_118, %c0_119, %c0_120] : memref<16x8x128xf32, #tpu.memory_space<vmem>>, vector<1x8x128xf32>
    %131 = vector.shape_cast %130 : vector<1x8x128xf32> to vector<8x128xf32>
    %132 = arith.addf %129, %131 : vector<8x128xf32>
    %c5_121 = arith.constant 5 : index
    %c0_122 = arith.constant 0 : index
    %c0_123 = arith.constant 0 : index
    %133 = vector.load %arg3[%c5_121, %c0_122, %c0_123] : memref<16x8x128xf32, #tpu.memory_space<vmem>>, vector<1x8x128xf32>
    %134 = vector.shape_cast %133 : vector<1x8x128xf32> to vector<8x128xf32>
    %135 = arith.mulf %126, %134 : vector<8x128xf32>
    %cst_124 = arith.constant dense<0.000000e+00> : vector<128xf32>
    %136 = vector.multi_reduction <add>, %135, %cst_124 [0] : vector<8x128xf32> to vector<128xf32>
    %137 = vector.shape_cast %136 : vector<128xf32> to vector<1x128xf32>
    %c5_125 = arith.constant 5 : index
    %c0_126 = arith.constant 0 : index
    %138 = vector.load %arg8[%c5_125, %c0_126] : memref<16x128xf32, #tpu.memory_space<vmem>>, vector<1x128xf32>
    tpu.vector_store %arg8[%c5_125, %c0_126], %137 {strides = array<i32>} : memref<16x128xf32, #tpu.memory_space<vmem>>, vector<1x128xf32>,
    %c10_127 = arith.constant 10 : index
    %c0_128 = arith.constant 0 : index
    %c0_129 = arith.constant 0 : index
    %139 = vector.load %arg3[%c10_127, %c0_128, %c0_129] : memref<16x8x128xf32, #tpu.memory_space<vmem>>, vector<1x8x128xf32>
    %140 = vector.shape_cast %139 : vector<1x8x128xf32> to vector<8x128xf32>
    %141 = arith.mulf %132, %140 : vector<8x128xf32>
    %cst_130 = arith.constant dense<0.000000e+00> : vector<128xf32>
    %142 = vector.multi_reduction <add>, %141, %cst_130 [0] : vector<8x128xf32> to vector<128xf32>
    %143 = vector.shape_cast %142 : vector<128xf32> to vector<1x128xf32>
    %c10_131 = arith.constant 10 : index
    %c0_132 = arith.constant 0 : index
    %144 = vector.load %arg9[%c10_131, %c0_132] : memref<16x128xf32, #tpu.memory_space<vmem>>, vector<1x128xf32>
    tpu.vector_store %arg9[%c10_131, %c0_132], %143 {strides = array<i32>} : memref<16x128xf32, #tpu.memory_space<vmem>>, vector<1x128xf32>,
    %c6 = arith.constant 6 : index
    %c0_133 = arith.constant 0 : index
    %c0_134 = arith.constant 0 : index
    %145 = vector.load %arg1[%c6, %c0_133, %c0_134] : memref<16x8x128xf32, #tpu.memory_space<vmem>>, vector<1x8x128xf32>
    %146 = vector.shape_cast %145 : vector<1x8x128xf32> to vector<8x128xf32>
    %147 = arith.mulf %126, %146 : vector<8x128xf32>
    %c6_135 = arith.constant 6 : index
    %c0_136 = arith.constant 0 : index
    %c0_137 = arith.constant 0 : index
    %148 = vector.load %arg2[%c6_135, %c0_136, %c0_137] : memref<16x8x128xf32, #tpu.memory_space<vmem>>, vector<1x8x128xf32>
    %149 = vector.shape_cast %148 : vector<1x8x128xf32> to vector<8x128xf32>
    %150 = arith.addf %147, %149 : vector<8x128xf32>
    %c9 = arith.constant 9 : index
    %c0_138 = arith.constant 0 : index
    %c0_139 = arith.constant 0 : index
    %151 = vector.load %arg1[%c9, %c0_138, %c0_139] : memref<16x8x128xf32, #tpu.memory_space<vmem>>, vector<1x8x128xf32>
    %152 = vector.shape_cast %151 : vector<1x8x128xf32> to vector<8x128xf32>
    %153 = arith.mulf %132, %152 : vector<8x128xf32>
    %c9_140 = arith.constant 9 : index
    %c0_141 = arith.constant 0 : index
    %c0_142 = arith.constant 0 : index
    %154 = vector.load %arg2[%c9_140, %c0_141, %c0_142] : memref<16x8x128xf32, #tpu.memory_space<vmem>>, vector<1x8x128xf32>
    %155 = vector.shape_cast %154 : vector<1x8x128xf32> to vector<8x128xf32>
    %156 = arith.addf %153, %155 : vector<8x128xf32>
    %c6_143 = arith.constant 6 : index
    %c0_144 = arith.constant 0 : index
    %c0_145 = arith.constant 0 : index
    %157 = vector.load %arg3[%c6_143, %c0_144, %c0_145] : memref<16x8x128xf32, #tpu.memory_space<vmem>>, vector<1x8x128xf32>
    %158 = vector.shape_cast %157 : vector<1x8x128xf32> to vector<8x128xf32>
    %159 = arith.mulf %150, %158 : vector<8x128xf32>
    %cst_146 = arith.constant dense<0.000000e+00> : vector<128xf32>
    %160 = vector.multi_reduction <add>, %159, %cst_146 [0] : vector<8x128xf32> to vector<128xf32>
    %161 = vector.shape_cast %160 : vector<128xf32> to vector<1x128xf32>
    %c6_147 = arith.constant 6 : index
    %c0_148 = arith.constant 0 : index
    %162 = vector.load %arg8[%c6_147, %c0_148] : memref<16x128xf32, #tpu.memory_space<vmem>>, vector<1x128xf32>
    tpu.vector_store %arg8[%c6_147, %c0_148], %161 {strides = array<i32>} : memref<16x128xf32, #tpu.memory_space<vmem>>, vector<1x128xf32>,
    %c9_149 = arith.constant 9 : index
    %c0_150 = arith.constant 0 : index
    %c0_151 = arith.constant 0 : index
    %163 = vector.load %arg3[%c9_149, %c0_150, %c0_151] : memref<16x8x128xf32, #tpu.memory_space<vmem>>, vector<1x8x128xf32>
    %164 = vector.shape_cast %163 : vector<1x8x128xf32> to vector<8x128xf32>
    %165 = arith.mulf %156, %164 : vector<8x128xf32>
    %cst_152 = arith.constant dense<0.000000e+00> : vector<128xf32>
    %166 = vector.multi_reduction <add>, %165, %cst_152 [0] : vector<8x128xf32> to vector<128xf32>
    %167 = vector.shape_cast %166 : vector<128xf32> to vector<1x128xf32>
    %c9_153 = arith.constant 9 : index
    %c0_154 = arith.constant 0 : index
    %168 = vector.load %arg9[%c9_153, %c0_154] : memref<16x128xf32, #tpu.memory_space<vmem>>, vector<1x128xf32>
    tpu.vector_store %arg9[%c9_153, %c0_154], %167 {strides = array<i32>} : memref<16x128xf32, #tpu.memory_space<vmem>>, vector<1x128xf32>,
    %c7 = arith.constant 7 : index
    %c0_155 = arith.constant 0 : index
    %c0_156 = arith.constant 0 : index
    %169 = vector.load %arg1[%c7, %c0_155, %c0_156] : memref<16x8x128xf32, #tpu.memory_space<vmem>>, vector<1x8x128xf32>
    %170 = vector.shape_cast %169 : vector<1x8x128xf32> to vector<8x128xf32>
    %171 = arith.mulf %150, %170 : vector<8x128xf32>
    %c7_157 = arith.constant 7 : index
    %c0_158 = arith.constant 0 : index
    %c0_159 = arith.constant 0 : index
    %172 = vector.load %arg2[%c7_157, %c0_158, %c0_159] : memref<16x8x128xf32, #tpu.memory_space<vmem>>, vector<1x8x128xf32>
    %173 = vector.shape_cast %172 : vector<1x8x128xf32> to vector<8x128xf32>
    %174 = arith.addf %171, %173 : vector<8x128xf32>
    %c8 = arith.constant 8 : index
    %c0_160 = arith.constant 0 : index
    %c0_161 = arith.constant 0 : index
    %175 = vector.load %arg1[%c8, %c0_160, %c0_161] : memref<16x8x128xf32, #tpu.memory_space<vmem>>, vector<1x8x128xf32>
    %176 = vector.shape_cast %175 : vector<1x8x128xf32> to vector<8x128xf32>
    %177 = arith.mulf %156, %176 : vector<8x128xf32>
    %c8_162 = arith.constant 8 : index
    %c0_163 = arith.constant 0 : index
    %c0_164 = arith.constant 0 : index
    %178 = vector.load %arg2[%c8_162, %c0_163, %c0_164] : memref<16x8x128xf32, #tpu.memory_space<vmem>>, vector<1x8x128xf32>
    %179 = vector.shape_cast %178 : vector<1x8x128xf32> to vector<8x128xf32>
    %180 = arith.addf %177, %179 : vector<8x128xf32>
    %c7_165 = arith.constant 7 : index
    %c0_166 = arith.constant 0 : index
    %c0_167 = arith.constant 0 : index
    %181 = vector.load %arg3[%c7_165, %c0_166, %c0_167] : memref<16x8x128xf32, #tpu.memory_space<vmem>>, vector<1x8x128xf32>
    %182 = vector.shape_cast %181 : vector<1x8x128xf32> to vector<8x128xf32>
    %183 = arith.mulf %174, %182 : vector<8x128xf32>
    %cst_168 = arith.constant dense<0.000000e+00> : vector<128xf32>
    %184 = vector.multi_reduction <add>, %183, %cst_168 [0] : vector<8x128xf32> to vector<128xf32>
    %185 = vector.shape_cast %184 : vector<128xf32> to vector<1x128xf32>
    %c7_169 = arith.constant 7 : index
    %c0_170 = arith.constant 0 : index
    %186 = vector.load %arg8[%c7_169, %c0_170] : memref<16x128xf32, #tpu.memory_space<vmem>>, vector<1x128xf32>
    tpu.vector_store %arg8[%c7_169, %c0_170], %185 {strides = array<i32>} : memref<16x128xf32, #tpu.memory_space<vmem>>, vector<1x128xf32>,
    %c8_171 = arith.constant 8 : index
    %c0_172 = arith.constant 0 : index
    %c0_173 = arith.constant 0 : index
    %187 = vector.load %arg3[%c8_171, %c0_172, %c0_173] : memref<16x8x128xf32, #tpu.memory_space<vmem>>, vector<1x8x128xf32>
    %188 = vector.shape_cast %187 : vector<1x8x128xf32> to vector<8x128xf32>
    %189 = arith.mulf %180, %188 : vector<8x128xf32>
    %cst_174 = arith.constant dense<0.000000e+00> : vector<128xf32>
    %190 = vector.multi_reduction <add>, %189, %cst_174 [0] : vector<8x128xf32> to vector<128xf32>
    %191 = vector.shape_cast %190 : vector<128xf32> to vector<1x128xf32>
    %c8_175 = arith.constant 8 : index
    %c0_176 = arith.constant 0 : index
    %192 = vector.load %arg9[%c8_175, %c0_176] : memref<16x128xf32, #tpu.memory_space<vmem>>, vector<1x128xf32>
    tpu.vector_store %arg9[%c8_175, %c0_176], %191 {strides = array<i32>} : memref<16x128xf32, #tpu.memory_space<vmem>>, vector<1x128xf32>,
    %c8_177 = arith.constant 8 : index
    %c0_178 = arith.constant 0 : index
    %c0_179 = arith.constant 0 : index
    %193 = vector.load %arg1[%c8_177, %c0_178, %c0_179] : memref<16x8x128xf32, #tpu.memory_space<vmem>>, vector<1x8x128xf32>
    %194 = vector.shape_cast %193 : vector<1x8x128xf32> to vector<8x128xf32>
    %195 = arith.mulf %174, %194 : vector<8x128xf32>
    %c8_180 = arith.constant 8 : index
    %c0_181 = arith.constant 0 : index
    %c0_182 = arith.constant 0 : index
    %196 = vector.load %arg2[%c8_180, %c0_181, %c0_182] : memref<16x8x128xf32, #tpu.memory_space<vmem>>, vector<1x8x128xf32>
    %197 = vector.shape_cast %196 : vector<1x8x128xf32> to vector<8x128xf32>
    %198 = arith.addf %195, %197 : vector<8x128xf32>
    %c7_183 = arith.constant 7 : index
    %c0_184 = arith.constant 0 : index
    %c0_185 = arith.constant 0 : index
    %199 = vector.load %arg1[%c7_183, %c0_184, %c0_185] : memref<16x8x128xf32, #tpu.memory_space<vmem>>, vector<1x8x128xf32>
    %200 = vector.shape_cast %199 : vector<1x8x128xf32> to vector<8x128xf32>
    %201 = arith.mulf %180, %200 : vector<8x128xf32>
    %c7_186 = arith.constant 7 : index
    %c0_187 = arith.constant 0 : index
    %c0_188 = arith.constant 0 : index
    %202 = vector.load %arg2[%c7_186, %c0_187, %c0_188] : memref<16x8x128xf32, #tpu.memory_space<vmem>>, vector<1x8x128xf32>
    %203 = vector.shape_cast %202 : vector<1x8x128xf32> to vector<8x128xf32>
    %204 = arith.addf %201, %203 : vector<8x128xf32>
    %c8_189 = arith.constant 8 : index
    %c0_190 = arith.constant 0 : index
    %c0_191 = arith.constant 0 : index
    %205 = vector.load %arg3[%c8_189, %c0_190, %c0_191] : memref<16x8x128xf32, #tpu.memory_space<vmem>>, vector<1x8x128xf32>
    %206 = vector.shape_cast %205 : vector<1x8x128xf32> to vector<8x128xf32>
    %207 = arith.mulf %198, %206 : vector<8x128xf32>
    %cst_192 = arith.constant dense<0.000000e+00> : vector<128xf32>
    %208 = vector.multi_reduction <add>, %207, %cst_192 [0] : vector<8x128xf32> to vector<128xf32>
    %209 = vector.shape_cast %208 : vector<128xf32> to vector<1x128xf32>
    %c8_193 = arith.constant 8 : index
    %c0_194 = arith.constant 0 : index
    %210 = vector.load %arg8[%c8_193, %c0_194] : memref<16x128xf32, #tpu.memory_space<vmem>>, vector<1x128xf32>
    tpu.vector_store %arg8[%c8_193, %c0_194], %209 {strides = array<i32>} : memref<16x128xf32, #tpu.memory_space<vmem>>, vector<1x128xf32>,
    %c7_195 = arith.constant 7 : index
    %c0_196 = arith.constant 0 : index
    %c0_197 = arith.constant 0 : index
    %211 = vector.load %arg3[%c7_195, %c0_196, %c0_197] : memref<16x8x128xf32, #tpu.memory_space<vmem>>, vector<1x8x128xf32>
    %212 = vector.shape_cast %211 : vector<1x8x128xf32> to vector<8x128xf32>
    %213 = arith.mulf %204, %212 : vector<8x128xf32>
    %cst_198 = arith.constant dense<0.000000e+00> : vector<128xf32>
    %214 = vector.multi_reduction <add>, %213, %cst_198 [0] : vector<8x128xf32> to vector<128xf32>
    %215 = vector.shape_cast %214 : vector<128xf32> to vector<1x128xf32>
    %c7_199 = arith.constant 7 : index
    %c0_200 = arith.constant 0 : index
    %216 = vector.load %arg9[%c7_199, %c0_200] : memref<16x128xf32, #tpu.memory_space<vmem>>, vector<1x128xf32>
    tpu.vector_store %arg9[%c7_199, %c0_200], %215 {strides = array<i32>} : memref<16x128xf32, #tpu.memory_space<vmem>>, vector<1x128xf32>,
    %c9_201 = arith.constant 9 : index
    %c0_202 = arith.constant 0 : index
    %c0_203 = arith.constant 0 : index
    %217 = vector.load %arg1[%c9_201, %c0_202, %c0_203] : memref<16x8x128xf32, #tpu.memory_space<vmem>>, vector<1x8x128xf32>
    %218 = vector.shape_cast %217 : vector<1x8x128xf32> to vector<8x128xf32>
    %219 = arith.mulf %198, %218 : vector<8x128xf32>
    %c9_204 = arith.constant 9 : index
    %c0_205 = arith.constant 0 : index
    %c0_206 = arith.constant 0 : index
    %220 = vector.load %arg2[%c9_204, %c0_205, %c0_206] : memref<16x8x128xf32, #tpu.memory_space<vmem>>, vector<1x8x128xf32>
    %221 = vector.shape_cast %220 : vector<1x8x128xf32> to vector<8x128xf32>
    %222 = arith.addf %219, %221 : vector<8x128xf32>
    %c6_207 = arith.constant 6 : index
    %c0_208 = arith.constant 0 : index
    %c0_209 = arith.constant 0 : index
    %223 = vector.load %arg1[%c6_207, %c0_208, %c0_209] : memref<16x8x128xf32, #tpu.memory_space<vmem>>, vector<1x8x128xf32>
    %224 = vector.shape_cast %223 : vector<1x8x128xf32> to vector<8x128xf32>
    %225 = arith.mulf %204, %224 : vector<8x128xf32>
    %c6_210 = arith.constant 6 : index
    %c0_211 = arith.constant 0 : index
    %c0_212 = arith.constant 0 : index
    %226 = vector.load %arg2[%c6_210, %c0_211, %c0_212] : memref<16x8x128xf32, #tpu.memory_space<vmem>>, vector<1x8x128xf32>
    %227 = vector.shape_cast %226 : vector<1x8x128xf32> to vector<8x128xf32>
    %228 = arith.addf %225, %227 : vector<8x128xf32>
    %c9_213 = arith.constant 9 : index
    %c0_214 = arith.constant 0 : index
    %c0_215 = arith.constant 0 : index
    %229 = vector.load %arg3[%c9_213, %c0_214, %c0_215] : memref<16x8x128xf32, #tpu.memory_space<vmem>>, vector<1x8x128xf32>
    %230 = vector.shape_cast %229 : vector<1x8x128xf32> to vector<8x128xf32>
    %231 = arith.mulf %222, %230 : vector<8x128xf32>
    %cst_216 = arith.constant dense<0.000000e+00> : vector<128xf32>
    %232 = vector.multi_reduction <add>, %231, %cst_216 [0] : vector<8x128xf32> to vector<128xf32>
    %233 = vector.shape_cast %232 : vector<128xf32> to vector<1x128xf32>
    %c9_217 = arith.constant 9 : index
    %c0_218 = arith.constant 0 : index
    %234 = vector.load %arg8[%c9_217, %c0_218] : memref<16x128xf32, #tpu.memory_space<vmem>>, vector<1x128xf32>
    tpu.vector_store %arg8[%c9_217, %c0_218], %233 {strides = array<i32>} : memref<16x128xf32, #tpu.memory_space<vmem>>, vector<1x128xf32>,
    %c6_219 = arith.constant 6 : index
    %c0_220 = arith.constant 0 : index
    %c0_221 = arith.constant 0 : index
    %235 = vector.load %arg3[%c6_219, %c0_220, %c0_221] : memref<16x8x128xf32, #tpu.memory_space<vmem>>, vector<1x8x128xf32>
    %236 = vector.shape_cast %235 : vector<1x8x128xf32> to vector<8x128xf32>
    %237 = arith.mulf %228, %236 : vector<8x128xf32>
    %cst_222 = arith.constant dense<0.000000e+00> : vector<128xf32>
    %238 = vector.multi_reduction <add>, %237, %cst_222 [0] : vector<8x128xf32> to vector<128xf32>
    %239 = vector.shape_cast %238 : vector<128xf32> to vector<1x128xf32>
    %c6_223 = arith.constant 6 : index
    %c0_224 = arith.constant 0 : index
    %240 = vector.load %arg9[%c6_223, %c0_224] : memref<16x128xf32, #tpu.memory_space<vmem>>, vector<1x128xf32>
    tpu.vector_store %arg9[%c6_223, %c0_224], %239 {strides = array<i32>} : memref<16x128xf32, #tpu.memory_space<vmem>>, vector<1x128xf32>,
    %c10_225 = arith.constant 10 : index
    %c0_226 = arith.constant 0 : index
    %c0_227 = arith.constant 0 : index
    %241 = vector.load %arg1[%c10_225, %c0_226, %c0_227] : memref<16x8x128xf32, #tpu.memory_space<vmem>>, vector<1x8x128xf32>
    %242 = vector.shape_cast %241 : vector<1x8x128xf32> to vector<8x128xf32>
    %243 = arith.mulf %222, %242 : vector<8x128xf32>
    %c10_228 = arith.constant 10 : index
    %c0_229 = arith.constant 0 : index
    %c0_230 = arith.constant 0 : index
    %244 = vector.load %arg2[%c10_228, %c0_229, %c0_230] : memref<16x8x128xf32, #tpu.memory_space<vmem>>, vector<1x8x128xf32>
    %245 = vector.shape_cast %244 : vector<1x8x128xf32> to vector<8x128xf32>
    %246 = arith.addf %243, %245 : vector<8x128xf32>
    %c5_231 = arith.constant 5 : index
    %c0_232 = arith.constant 0 : index
    %c0_233 = arith.constant 0 : index
    %247 = vector.load %arg1[%c5_231, %c0_232, %c0_233] : memref<16x8x128xf32, #tpu.memory_space<vmem>>, vector<1x8x128xf32>
    %248 = vector.shape_cast %247 : vector<1x8x128xf32> to vector<8x128xf32>
    %249 = arith.mulf %228, %248 : vector<8x128xf32>
    %c5_234 = arith.constant 5 : index
    %c0_235 = arith.constant 0 : index
    %c0_236 = arith.constant 0 : index
    %250 = vector.load %arg2[%c5_234, %c0_235, %c0_236] : memref<16x8x128xf32, #tpu.memory_space<vmem>>, vector<1x8x128xf32>
    %251 = vector.shape_cast %250 : vector<1x8x128xf32> to vector<8x128xf32>
    %252 = arith.addf %249, %251 : vector<8x128xf32>
    %c10_237 = arith.constant 10 : index
    %c0_238 = arith.constant 0 : index
    %c0_239 = arith.constant 0 : index
    %253 = vector.load %arg3[%c10_237, %c0_238, %c0_239] : memref<16x8x128xf32, #tpu.memory_space<vmem>>, vector<1x8x128xf32>
    %254 = vector.shape_cast %253 : vector<1x8x128xf32> to vector<8x128xf32>
    %255 = arith.mulf %246, %254 : vector<8x128xf32>
    %cst_240 = arith.constant dense<0.000000e+00> : vector<128xf32>
    %256 = vector.multi_reduction <add>, %255, %cst_240 [0] : vector<8x128xf32> to vector<128xf32>
    %257 = vector.shape_cast %256 : vector<128xf32> to vector<1x128xf32>
    %c10_241 = arith.constant 10 : index
    %c0_242 = arith.constant 0 : index
    %258 = vector.load %arg8[%c10_241, %c0_242] : memref<16x128xf32, #tpu.memory_space<vmem>>, vector<1x128xf32>
    tpu.vector_store %arg8[%c10_241, %c0_242], %257 {strides = array<i32>} : memref<16x128xf32, #tpu.memory_space<vmem>>, vector<1x128xf32>,
    %c5_243 = arith.constant 5 : index
    %c0_244 = arith.constant 0 : index
    %c0_245 = arith.constant 0 : index
    %259 = vector.load %arg3[%c5_243, %c0_244, %c0_245] : memref<16x8x128xf32, #tpu.memory_space<vmem>>, vector<1x8x128xf32>
    %260 = vector.shape_cast %259 : vector<1x8x128xf32> to vector<8x128xf32>
    %261 = arith.mulf %252, %260 : vector<8x128xf32>
    %cst_246 = arith.constant dense<0.000000e+00> : vector<128xf32>
    %262 = vector.multi_reduction <add>, %261, %cst_246 [0] : vector<8x128xf32> to vector<128xf32>
    %263 = vector.shape_cast %262 : vector<128xf32> to vector<1x128xf32>
    %c5_247 = arith.constant 5 : index
    %c0_248 = arith.constant 0 : index
    %264 = vector.load %arg9[%c5_247, %c0_248] : memref<16x128xf32, #tpu.memory_space<vmem>>, vector<1x128xf32>
    tpu.vector_store %arg9[%c5_247, %c0_248], %263 {strides = array<i32>} : memref<16x128xf32, #tpu.memory_space<vmem>>, vector<1x128xf32>,
    %c11_249 = arith.constant 11 : index
    %c0_250 = arith.constant 0 : index
    %c0_251 = arith.constant 0 : index
    %265 = vector.load %arg1[%c11_249, %c0_250, %c0_251] : memref<16x8x128xf32, #tpu.memory_space<vmem>>, vector<1x8x128xf32>
    %266 = vector.shape_cast %265 : vector<1x8x128xf32> to vector<8x128xf32>
    %267 = arith.mulf %246, %266 : vector<8x128xf32>
    %c11_252 = arith.constant 11 : index
    %c0_253 = arith.constant 0 : index
    %c0_254 = arith.constant 0 : index
    %268 = vector.load %arg2[%c11_252, %c0_253, %c0_254] : memref<16x8x128xf32, #tpu.memory_space<vmem>>, vector<1x8x128xf32>
    %269 = vector.shape_cast %268 : vector<1x8x128xf32> to vector<8x128xf32>
    %270 = arith.addf %267, %269 : vector<8x128xf32>
    %c4_255 = arith.constant 4 : index
    %c0_256 = arith.constant 0 : index
    %c0_257 = arith.constant 0 : index
    %271 = vector.load %arg1[%c4_255, %c0_256, %c0_257] : memref<16x8x128xf32, #tpu.memory_space<vmem>>, vector<1x8x128xf32>
    %272 = vector.shape_cast %271 : vector<1x8x128xf32> to vector<8x128xf32>
    %273 = arith.mulf %252, %272 : vector<8x128xf32>
    %c4_258 = arith.constant 4 : index
    %c0_259 = arith.constant 0 : index
    %c0_260 = arith.constant 0 : index
    %274 = vector.load %arg2[%c4_258, %c0_259, %c0_260] : memref<16x8x128xf32, #tpu.memory_space<vmem>>, vector<1x8x128xf32>
    %275 = vector.shape_cast %274 : vector<1x8x128xf32> to vector<8x128xf32>
    %276 = arith.addf %273, %275 : vector<8x128xf32>
    %c11_261 = arith.constant 11 : index
    %c0_262 = arith.constant 0 : index
    %c0_263 = arith.constant 0 : index
    %277 = vector.load %arg3[%c11_261, %c0_262, %c0_263] : memref<16x8x128xf32, #tpu.memory_space<vmem>>, vector<1x8x128xf32>
    %278 = vector.shape_cast %277 : vector<1x8x128xf32> to vector<8x128xf32>
    %279 = arith.mulf %270, %278 : vector<8x128xf32>
    %cst_264 = arith.constant dense<0.000000e+00> : vector<128xf32>
    %280 = vector.multi_reduction <add>, %279, %cst_264 [0] : vector<8x128xf32> to vector<128xf32>
    %281 = vector.shape_cast %280 : vector<128xf32> to vector<1x128xf32>
    %c11_265 = arith.constant 11 : index
    %c0_266 = arith.constant 0 : index
    %282 = vector.load %arg8[%c11_265, %c0_266] : memref<16x128xf32, #tpu.memory_space<vmem>>, vector<1x128xf32>
    tpu.vector_store %arg8[%c11_265, %c0_266], %281 {strides = array<i32>} : memref<16x128xf32, #tpu.memory_space<vmem>>, vector<1x128xf32>,
    %c4_267 = arith.constant 4 : index
    %c0_268 = arith.constant 0 : index
    %c0_269 = arith.constant 0 : index
    %283 = vector.load %arg3[%c4_267, %c0_268, %c0_269] : memref<16x8x128xf32, #tpu.memory_space<vmem>>, vector<1x8x128xf32>
    %284 = vector.shape_cast %283 : vector<1x8x128xf32> to vector<8x128xf32>
    %285 = arith.mulf %276, %284 : vector<8x128xf32>
    %cst_270 = arith.constant dense<0.000000e+00> : vector<128xf32>
    %286 = vector.multi_reduction <add>, %285, %cst_270 [0] : vector<8x128xf32> to vector<128xf32>
    %287 = vector.shape_cast %286 : vector<128xf32> to vector<1x128xf32>
    %c4_271 = arith.constant 4 : index
    %c0_272 = arith.constant 0 : index
    %288 = vector.load %arg9[%c4_271, %c0_272] : memref<16x128xf32, #tpu.memory_space<vmem>>, vector<1x128xf32>
    tpu.vector_store %arg9[%c4_271, %c0_272], %287 {strides = array<i32>} : memref<16x128xf32, #tpu.memory_space<vmem>>, vector<1x128xf32>,
    %c12_273 = arith.constant 12 : index
    %c0_274 = arith.constant 0 : index
    %c0_275 = arith.constant 0 : index
    %289 = vector.load %arg1[%c12_273, %c0_274, %c0_275] : memref<16x8x128xf32, #tpu.memory_space<vmem>>, vector<1x8x128xf32>
    %290 = vector.shape_cast %289 : vector<1x8x128xf32> to vector<8x128xf32>
    %291 = arith.mulf %270, %290 : vector<8x128xf32>
    %c12_276 = arith.constant 12 : index
    %c0_277 = arith.constant 0 : index
    %c0_278 = arith.constant 0 : index
    %292 = vector.load %arg2[%c12_276, %c0_277, %c0_278] : memref<16x8x128xf32, #tpu.memory_space<vmem>>, vector<1x8x128xf32>
    %293 = vector.shape_cast %292 : vector<1x8x128xf32> to vector<8x128xf32>
    %294 = arith.addf %291, %293 : vector<8x128xf32>
    %c3_279 = arith.constant 3 : index
    %c0_280 = arith.constant 0 : index
    %c0_281 = arith.constant 0 : index
    %295 = vector.load %arg1[%c3_279, %c0_280, %c0_281] : memref<16x8x128xf32, #tpu.memory_space<vmem>>, vector<1x8x128xf32>
    %296 = vector.shape_cast %295 : vector<1x8x128xf32> to vector<8x128xf32>
    %297 = arith.mulf %276, %296 : vector<8x128xf32>
    %c3_282 = arith.constant 3 : index
    %c0_283 = arith.constant 0 : index
    %c0_284 = arith.constant 0 : index
    %298 = vector.load %arg2[%c3_282, %c0_283, %c0_284] : memref<16x8x128xf32, #tpu.memory_space<vmem>>, vector<1x8x128xf32>
    %299 = vector.shape_cast %298 : vector<1x8x128xf32> to vector<8x128xf32>
    %300 = arith.addf %297, %299 : vector<8x128xf32>
    %c12_285 = arith.constant 12 : index
    %c0_286 = arith.constant 0 : index
    %c0_287 = arith.constant 0 : index
    %301 = vector.load %arg3[%c12_285, %c0_286, %c0_287] : memref<16x8x128xf32, #tpu.memory_space<vmem>>, vector<1x8x128xf32>
    %302 = vector.shape_cast %301 : vector<1x8x128xf32> to vector<8x128xf32>
    %303 = arith.mulf %294, %302 : vector<8x128xf32>
    %cst_288 = arith.constant dense<0.000000e+00> : vector<128xf32>
    %304 = vector.multi_reduction <add>, %303, %cst_288 [0] : vector<8x128xf32> to vector<128xf32>
    %305 = vector.shape_cast %304 : vector<128xf32> to vector<1x128xf32>
    %c12_289 = arith.constant 12 : index
    %c0_290 = arith.constant 0 : index
    %306 = vector.load %arg8[%c12_289, %c0_290] : memref<16x128xf32, #tpu.memory_space<vmem>>, vector<1x128xf32>
    tpu.vector_store %arg8[%c12_289, %c0_290], %305 {strides = array<i32>} : memref<16x128xf32, #tpu.memory_space<vmem>>, vector<1x128xf32>,
    %c3_291 = arith.constant 3 : index
    %c0_292 = arith.constant 0 : index
    %c0_293 = arith.constant 0 : index
    %307 = vector.load %arg3[%c3_291, %c0_292, %c0_293] : memref<16x8x128xf32, #tpu.memory_space<vmem>>, vector<1x8x128xf32>
    %308 = vector.shape_cast %307 : vector<1x8x128xf32> to vector<8x128xf32>
    %309 = arith.mulf %300, %308 : vector<8x128xf32>
    %cst_294 = arith.constant dense<0.000000e+00> : vector<128xf32>
    %310 = vector.multi_reduction <add>, %309, %cst_294 [0] : vector<8x128xf32> to vector<128xf32>
    %311 = vector.shape_cast %310 : vector<128xf32> to vector<1x128xf32>
    %c3_295 = arith.constant 3 : index
    %c0_296 = arith.constant 0 : index
    %312 = vector.load %arg9[%c3_295, %c0_296] : memref<16x128xf32, #tpu.memory_space<vmem>>, vector<1x128xf32>
    tpu.vector_store %arg9[%c3_295, %c0_296], %311 {strides = array<i32>} : memref<16x128xf32, #tpu.memory_space<vmem>>, vector<1x128xf32>,
    %c13_297 = arith.constant 13 : index
    %c0_298 = arith.constant 0 : index
    %c0_299 = arith.constant 0 : index
    %313 = vector.load %arg1[%c13_297, %c0_298, %c0_299] : memref<16x8x128xf32, #tpu.memory_space<vmem>>, vector<1x8x128xf32>
    %314 = vector.shape_cast %313 : vector<1x8x128xf32> to vector<8x128xf32>
    %315 = arith.mulf %294, %314 : vector<8x128xf32>
    %c13_300 = arith.constant 13 : index
    %c0_301 = arith.constant 0 : index
    %c0_302 = arith.constant 0 : index
    %316 = vector.load %arg2[%c13_300, %c0_301, %c0_302] : memref<16x8x128xf32, #tpu.memory_space<vmem>>, vector<1x8x128xf32>
    %317 = vector.shape_cast %316 : vector<1x8x128xf32> to vector<8x128xf32>
    %318 = arith.addf %315, %317 : vector<8x128xf32>
    %c2_303 = arith.constant 2 : index
    %c0_304 = arith.constant 0 : index
    %c0_305 = arith.constant 0 : index
    %319 = vector.load %arg1[%c2_303, %c0_304, %c0_305] : memref<16x8x128xf32, #tpu.memory_space<vmem>>, vector<1x8x128xf32>
    %320 = vector.shape_cast %319 : vector<1x8x128xf32> to vector<8x128xf32>
    %321 = arith.mulf %300, %320 : vector<8x128xf32>
    %c2_306 = arith.constant 2 : index
    %c0_307 = arith.constant 0 : index
    %c0_308 = arith.constant 0 : index
    %322 = vector.load %arg2[%c2_306, %c0_307, %c0_308] : memref<16x8x128xf32, #tpu.memory_space<vmem>>, vector<1x8x128xf32>
    %323 = vector.shape_cast %322 : vector<1x8x128xf32> to vector<8x128xf32>
    %324 = arith.addf %321, %323 : vector<8x128xf32>
    %c13_309 = arith.constant 13 : index
    %c0_310 = arith.constant 0 : index
    %c0_311 = arith.constant 0 : index
    %325 = vector.load %arg3[%c13_309, %c0_310, %c0_311] : memref<16x8x128xf32, #tpu.memory_space<vmem>>, vector<1x8x128xf32>
    %326 = vector.shape_cast %325 : vector<1x8x128xf32> to vector<8x128xf32>
    %327 = arith.mulf %318, %326 : vector<8x128xf32>
    %cst_312 = arith.constant dense<0.000000e+00> : vector<128xf32>
    %328 = vector.multi_reduction <add>, %327, %cst_312 [0] : vector<8x128xf32> to vector<128xf32>
    %329 = vector.shape_cast %328 : vector<128xf32> to vector<1x128xf32>
    %c13_313 = arith.constant 13 : index
    %c0_314 = arith.constant 0 : index
    %330 = vector.load %arg8[%c13_313, %c0_314] : memref<16x128xf32, #tpu.memory_space<vmem>>, vector<1x128xf32>
    tpu.vector_store %arg8[%c13_313, %c0_314], %329 {strides = array<i32>} : memref<16x128xf32, #tpu.memory_space<vmem>>, vector<1x128xf32>,
    %c2_315 = arith.constant 2 : index
    %c0_316 = arith.constant 0 : index
    %c0_317 = arith.constant 0 : index
    %331 = vector.load %arg3[%c2_315, %c0_316, %c0_317] : memref<16x8x128xf32, #tpu.memory_space<vmem>>, vector<1x8x128xf32>
    %332 = vector.shape_cast %331 : vector<1x8x128xf32> to vector<8x128xf32>
    %333 = arith.mulf %324, %332 : vector<8x128xf32>
    %cst_318 = arith.constant dense<0.000000e+00> : vector<128xf32>
    %334 = vector.multi_reduction <add>, %333, %cst_318 [0] : vector<8x128xf32> to vector<128xf32>
    %335 = vector.shape_cast %334 : vector<128xf32> to vector<1x128xf32>
    %c2_319 = arith.constant 2 : index
    %c0_320 = arith.constant 0 : index
    %336 = vector.load %arg9[%c2_319, %c0_320] : memref<16x128xf32, #tpu.memory_space<vmem>>, vector<1x128xf32>
    tpu.vector_store %arg9[%c2_319, %c0_320], %335 {strides = array<i32>} : memref<16x128xf32, #tpu.memory_space<vmem>>, vector<1x128xf32>,
    %c14_321 = arith.constant 14 : index
    %c0_322 = arith.constant 0 : index
    %c0_323 = arith.constant 0 : index
    %337 = vector.load %arg1[%c14_321, %c0_322, %c0_323] : memref<16x8x128xf32, #tpu.memory_space<vmem>>, vector<1x8x128xf32>
    %338 = vector.shape_cast %337 : vector<1x8x128xf32> to vector<8x128xf32>
    %339 = arith.mulf %318, %338 : vector<8x128xf32>
    %c14_324 = arith.constant 14 : index
    %c0_325 = arith.constant 0 : index
    %c0_326 = arith.constant 0 : index
    %340 = vector.load %arg2[%c14_324, %c0_325, %c0_326] : memref<16x8x128xf32, #tpu.memory_space<vmem>>, vector<1x8x128xf32>
    %341 = vector.shape_cast %340 : vector<1x8x128xf32> to vector<8x128xf32>
    %342 = arith.addf %339, %341 : vector<8x128xf32>
    %c1_327 = arith.constant 1 : index
    %c0_328 = arith.constant 0 : index
    %c0_329 = arith.constant 0 : index
    %343 = vector.load %arg1[%c1_327, %c0_328, %c0_329] : memref<16x8x128xf32, #tpu.memory_space<vmem>>, vector<1x8x128xf32>
    %344 = vector.shape_cast %343 : vector<1x8x128xf32> to vector<8x128xf32>
    %345 = arith.mulf %324, %344 : vector<8x128xf32>
    %c1_330 = arith.constant 1 : index
    %c0_331 = arith.constant 0 : index
    %c0_332 = arith.constant 0 : index
    %346 = vector.load %arg2[%c1_330, %c0_331, %c0_332] : memref<16x8x128xf32, #tpu.memory_space<vmem>>, vector<1x8x128xf32>
    %347 = vector.shape_cast %346 : vector<1x8x128xf32> to vector<8x128xf32>
    %348 = arith.addf %345, %347 : vector<8x128xf32>
    %c14_333 = arith.constant 14 : index
    %c0_334 = arith.constant 0 : index
    %c0_335 = arith.constant 0 : index
    %349 = vector.load %arg3[%c14_333, %c0_334, %c0_335] : memref<16x8x128xf32, #tpu.memory_space<vmem>>, vector<1x8x128xf32>
    %350 = vector.shape_cast %349 : vector<1x8x128xf32> to vector<8x128xf32>
    %351 = arith.mulf %342, %350 : vector<8x128xf32>
    %cst_336 = arith.constant dense<0.000000e+00> : vector<128xf32>
    %352 = vector.multi_reduction <add>, %351, %cst_336 [0] : vector<8x128xf32> to vector<128xf32>
    %353 = vector.shape_cast %352 : vector<128xf32> to vector<1x128xf32>
    %c14_337 = arith.constant 14 : index
    %c0_338 = arith.constant 0 : index
    %354 = vector.load %arg8[%c14_337, %c0_338] : memref<16x128xf32, #tpu.memory_space<vmem>>, vector<1x128xf32>
    tpu.vector_store %arg8[%c14_337, %c0_338], %353 {strides = array<i32>} : memref<16x128xf32, #tpu.memory_space<vmem>>, vector<1x128xf32>,
    %c1_339 = arith.constant 1 : index
    %c0_340 = arith.constant 0 : index
    %c0_341 = arith.constant 0 : index
    %355 = vector.load %arg3[%c1_339, %c0_340, %c0_341] : memref<16x8x128xf32, #tpu.memory_space<vmem>>, vector<1x8x128xf32>
    %356 = vector.shape_cast %355 : vector<1x8x128xf32> to vector<8x128xf32>
    %357 = arith.mulf %348, %356 : vector<8x128xf32>
    %cst_342 = arith.constant dense<0.000000e+00> : vector<128xf32>
    %358 = vector.multi_reduction <add>, %357, %cst_342 [0] : vector<8x128xf32> to vector<128xf32>
    %359 = vector.shape_cast %358 : vector<128xf32> to vector<1x128xf32>
    %c1_343 = arith.constant 1 : index
    %c0_344 = arith.constant 0 : index
    %360 = vector.load %arg9[%c1_343, %c0_344] : memref<16x128xf32, #tpu.memory_space<vmem>>, vector<1x128xf32>
    tpu.vector_store %arg9[%c1_343, %c0_344], %359 {strides = array<i32>} : memref<16x128xf32, #tpu.memory_space<vmem>>, vector<1x128xf32>,
    %c15_345 = arith.constant 15 : index
    %c0_346 = arith.constant 0 : index
    %c0_347 = arith.constant 0 : index
    %361 = vector.load %arg1[%c15_345, %c0_346, %c0_347] : memref<16x8x128xf32, #tpu.memory_space<vmem>>, vector<1x8x128xf32>
    %362 = vector.shape_cast %361 : vector<1x8x128xf32> to vector<8x128xf32>
    %363 = arith.mulf %342, %362 : vector<8x128xf32>
    %c15_348 = arith.constant 15 : index
    %c0_349 = arith.constant 0 : index
    %c0_350 = arith.constant 0 : index
    %364 = vector.load %arg2[%c15_348, %c0_349, %c0_350] : memref<16x8x128xf32, #tpu.memory_space<vmem>>, vector<1x8x128xf32>
    %365 = vector.shape_cast %364 : vector<1x8x128xf32> to vector<8x128xf32>
    %366 = arith.addf %363, %365 : vector<8x128xf32>
    %c0_351 = arith.constant 0 : index
    %c0_352 = arith.constant 0 : index
    %c0_353 = arith.constant 0 : index
    %367 = vector.load %arg1[%c0_351, %c0_352, %c0_353] : memref<16x8x128xf32, #tpu.memory_space<vmem>>, vector<1x8x128xf32>
    %368 = vector.shape_cast %367 : vector<1x8x128xf32> to vector<8x128xf32>
    %369 = arith.mulf %348, %368 : vector<8x128xf32>
    %c0_354 = arith.constant 0 : index
    %c0_355 = arith.constant 0 : index
    %c0_356 = arith.constant 0 : index
    %370 = vector.load %arg2[%c0_354, %c0_355, %c0_356] : memref<16x8x128xf32, #tpu.memory_space<vmem>>, vector<1x8x128xf32>
    %371 = vector.shape_cast %370 : vector<1x8x128xf32> to vector<8x128xf32>
    %372 = arith.addf %369, %371 : vector<8x128xf32>
    %c15_357 = arith.constant 15 : index
    %c0_358 = arith.constant 0 : index
    %c0_359 = arith.constant 0 : index
    %373 = vector.load %arg3[%c15_357, %c0_358, %c0_359] : memref<16x8x128xf32, #tpu.memory_space<vmem>>, vector<1x8x128xf32>
    %374 = vector.shape_cast %373 : vector<1x8x128xf32> to vector<8x128xf32>
    %375 = arith.mulf %366, %374 : vector<8x128xf32>
    %cst_360 = arith.constant dense<0.000000e+00> : vector<128xf32>
    %376 = vector.multi_reduction <add>, %375, %cst_360 [0] : vector<8x128xf32> to vector<128xf32>
    %377 = vector.shape_cast %376 : vector<128xf32> to vector<1x128xf32>
    %c15_361 = arith.constant 15 : index
    %c0_362 = arith.constant 0 : index
    %378 = vector.load %arg8[%c15_361, %c0_362] : memref<16x128xf32, #tpu.memory_space<vmem>>, vector<1x128xf32>
    tpu.vector_store %arg8[%c15_361, %c0_362], %377 {strides = array<i32>} : memref<16x128xf32, #tpu.memory_space<vmem>>, vector<1x128xf32>,
    %c0_363 = arith.constant 0 : index
    %c0_364 = arith.constant 0 : index
    %c0_365 = arith.constant 0 : index
    %379 = vector.load %arg3[%c0_363, %c0_364, %c0_365] : memref<16x8x128xf32, #tpu.memory_space<vmem>>, vector<1x8x128xf32>
    %380 = vector.shape_cast %379 : vector<1x8x128xf32> to vector<8x128xf32>
    %381 = arith.mulf %372, %380 : vector<8x128xf32>
    %cst_366 = arith.constant dense<0.000000e+00> : vector<128xf32>
    %382 = vector.multi_reduction <add>, %381, %cst_366 [0] : vector<8x128xf32> to vector<128xf32>
    %383 = vector.shape_cast %382 : vector<128xf32> to vector<1x128xf32>
    %c0_367 = arith.constant 0 : index
    %c0_368 = arith.constant 0 : index
    %384 = vector.load %arg9[%c0_367, %c0_368] : memref<16x128xf32, #tpu.memory_space<vmem>>, vector<1x128xf32>
    tpu.vector_store %arg9[%c0_367, %c0_368], %383 {strides = array<i32>} : memref<16x128xf32, #tpu.memory_space<vmem>>, vector<1x128xf32>,
    %c0_369 = arith.constant 0 : index
    %c0_370 = arith.constant 0 : index
    %385 = vector.load %arg8[%c0_369, %c0_370] : memref<16x128xf32, #tpu.memory_space<vmem>>, vector<16x128xf32>
    %c0_371 = arith.constant 0 : index
    %c0_372 = arith.constant 0 : index
    %386 = vector.load %arg9[%c0_371, %c0_372] : memref<16x128xf32, #tpu.memory_space<vmem>>, vector<16x128xf32>
    %387 = arith.addf %385, %386 : vector<16x128xf32>
    %cst_373 = arith.constant 5.000000e-01 : f32
    %388 = vector.broadcast %cst_373 : f32 to vector<16x128xf32>
    %389 = arith.mulf %388, %387 : vector<16x128xf32>
    %c0_374 = arith.constant 0 : index
    %c0_375 = arith.constant 0 : index
    %390 = vector.load %arg4[%c0_374, %c0_375] : memref<16x128xf32, #tpu.memory_space<vmem>>, vector<16x128xf32>
    %391 = arith.addf %389, %390 : vector<16x128xf32>
    %c0_376 = arith.constant 0 : index
    %c0_377 = arith.constant 0 : index
    %392 = vector.load %arg6[%c0_376, %c0_377] : memref<16x128xf32, #tpu.memory_space<vmem>>, vector<16x128xf32>
    tpu.vector_store %arg6[%c0_376, %c0_377], %391 {strides = array<i32>} : memref<16x128xf32, #tpu.memory_space<vmem>>, vector<16x128xf32>,
    %393 = arith.addf %366, %372 : vector<8x128xf32>
    %cst_378 = arith.constant 5.000000e-01 : f32
    %394 = vector.broadcast %cst_378 : f32 to vector<8x128xf32>
    %395 = arith.mulf %394, %393 : vector<8x128xf32>
    %c0_379 = arith.constant 0 : index
    %c0_380 = arith.constant 0 : index
    %396 = vector.load %arg7[%c0_379, %c0_380] : memref<8x128xf32, #tpu.memory_space<vmem>>, vector<8x128xf32>
    tpu.vector_store %arg7[%c0_379, %c0_380], %395 {strides = array<i32>} : memref<8x128xf32, #tpu.memory_space<vmem>>, vector<8x128xf32>,
    return
  }
  func.func @transform_0(%arg0: i32) -> (i32, i32, i32) {
    %c0_i32 = arith.constant 0 : i32
    %c0_i32_0 = arith.constant 0 : i32
    %c0_i32_1 = arith.constant 0 : i32
    %c0_i32_2 = arith.constant 0 : i32
    return %c0_i32, %c0_i32_0, %c0_i32_1 : i32, i32, i32
  }
  func.func @transform_1(%arg0: i32) -> (i32, i32, i32) {
    %c0_i32 = arith.constant 0 : i32
    %c0_i32_0 = arith.constant 0 : i32
    %c0_i32_1 = arith.constant 0 : i32
    %c0_i32_2 = arith.constant 0 : i32
    return %c0_i32, %c0_i32_0, %c0_i32_1 : i32, i32, i32
  }
  func.func @transform_2(%arg0: i32) -> (i32, i32, i32) {
    %c0_i32 = arith.constant 0 : i32
    %c0_i32_0 = arith.constant 0 : i32
    %c0_i32_1 = arith.constant 0 : i32
    %c0_i32_2 = arith.constant 0 : i32
    return %c0_i32, %c0_i32_0, %c0_i32_1 : i32, i32, i32
  }
  func.func @transform_3(%arg0: i32) -> (i32, i32) {
    %c0_i32 = arith.constant 0 : i32
    %c0_i32_0 = arith.constant 0 : i32
    %c0_i32_1 = arith.constant 0 : i32
    return %c0_i32, %c0_i32_0 : i32, i32
  }
  func.func @transform_4(%arg0: i32) -> (i32, i32) {
    %c0_i32 = arith.constant 0 : i32
    %c0_i32_0 = arith.constant 0 : i32
    %c0_i32_1 = arith.constant 0 : i32
    return %c0_i32, %c0_i32_0 : i32, i32
  }
  func.func @transform_5(%arg0: i32) -> (i32, i32) {
    %c0_i32 = arith.constant 0 : i32
    %c0_i32_0 = arith.constant 0 : i32
    %c0_i32_1 = arith.constant 0 : i32
    return %c0_i32, %c0_i32_0 : i32, i32
  }
  func.func @transform_6(%arg0: i32) -> (i32, i32) {
    %c0_i32 = arith.constant 0 : i32
    %c0_i32_0 = arith.constant 0 : i32
    %c0_i32_1 = arith.constant 0 : i32
    return %c0_i32, %c0_i32_0 : i32, i32
  }
}

</mosaic_0001>

<bundles_post_ra>
// kernel: multihead_2d_issm_forward.1
= control target key start
LH: loop header
LB: loop body
LE: loop exit
PB: predicated region body
PF: predicated region fallthrough
CT: control target
= control target key end

     0   :  { %s964_s0 = inlined_call_operand.vmem [shape: f32[16,8,128], index: 0, kind: input, shape index: {}]   ;;  %s965_s1 = inlined_call_operand.vmem [shape: f32[16,8,128], index: 1, kind: input, shape index: {}]   ;;  %s966_s2 = inlined_call_operand.vmem [shape: f32[16,8,128], index: 2, kind: input, shape index: {}]   ;;  %s967_s4 = inlined_call_operand.vmem [shape: f32[8,128], index: 4, kind: input, shape index: {}]   ;;  %s968_s6 = inlined_call_operand.vmem [shape: f32[8,128], index: 6, kind: output, shape index: {1}]   ;;  %s969_s3 = inlined_call_operand.vmem [shape: f32[16,128], index: 3, kind: input, shape index: {}]   ;;  %s970_s5 = inlined_call_operand.vmem [shape: f32[16,128], index: 5, kind: output, shape index: {0}]  }
   0x1   :  { %v22_v0 = vld [vmem:[%s967_s4] sm:$0xff]  ;;  %v651_v4 = vld [vmem:[%s964_s0 + $0x78] sm:$0xff]  ;;  %v667_v8 = vld [vmem:[%s964_s0 + $0x8] sm:$0xff] }
   0x2   :  { %v640_v1 = vld [vmem:[%s964_s0] sm:$0xff]  ;;  %989 = vst [vmem:[#allocation6_spill] sm:$0xff] %v651_v4  ;;  %v656_v5 = vld [vmem:[%s965_s1 + $0x78] sm:$0xff]  ;;  %v29_v7 = vmul.f32 %v651_v4, %v22_v0  ;;  %v678_v11 = vld [vmem:[%s964_s0 + $0x70] sm:$0xff] }
   0x3   :  { %987 = vst [vmem:[#allocation4_spill] sm:$0xff] %v640_v1  ;;  %v645_v2 = vld [vmem:[%s965_s1] sm:$0xff]  ;;  %v24_v3 = vmul.f32 %v640_v1, %v22_v0  ;;  %v673_v10 = vld [vmem:[%s966_s2 + $0x78] sm:$0xff]  ;;  %v684_v13 = vld [vmem:[%s965_s1 + $0x8] sm:$0xff] }
   0x4   :  { %988 = vst [vmem:[#allocation5_spill] sm:$0xff] %v645_v2  ;;  %v661_v6 = vld [vmem:[%s966_s2] sm:$0xff]  ;;  %v32_v12 = vadd.f32 %v656_v5, %v29_v7  ;;  %v691_v16 = vld [vmem:[%s965_s1 + $0x70] sm:$0xff]  ;;  %v697_v18 = vld [vmem:[%s966_s2 + $0x8] sm:$0xff] }
   0x5   :  { %990 = vst [vmem:[#allocation7_spill] sm:$0xff] %v656_v5  ;;  %v26_v9 = vadd.f32 %v645_v2, %v24_v3  ;;  %v703_v20 = vld [vmem:[%s964_s0 + $0x10] sm:$0xff]  ;;  %v714_v24 = vld [vmem:[%s964_s0 + $0x68] sm:$0xff]  ;;  %v739_v36 = vld [vmem:[%s964_s0 + $0x18] sm:$0xff] }
   0x6   :  { %991 = vst [vmem:[#allocation8_spill] sm:$0xff] %v661_v6  ;;  %v44_v17 = vmul.f32 %v673_v10, %v32_v12  ;;  %v60_v19 = vmul.f32 %v678_v11, %v32_v12  ;;  %v709_v23 = vld [vmem:[%s966_s2 + $0x70] sm:$0xff]  ;;  %v727_v31 = vld [vmem:[%s965_s1 + $0x68] sm:$0xff]  ;;  %v750_v41 = vld [vmem:[%s964_s0 + $0x60] sm:$0xff] }
   0x7   :  { %992 = vst [vmem:[#allocation9_spill] sm:$0xff] %v667_v8  ;;  %v34_v14 = vmul.f32 %v661_v6, %v26_v9  ;;  %v54_v15 = vmul.f32 %v667_v8, %v26_v9  ;;  %v720_v27 = vld [vmem:[%s965_s1 + $0x10] sm:$0xff]  ;;  %v745_v40 = vld [vmem:[%s966_s2 + $0x68] sm:$0xff]  ;;  %v756_v45 = vld [vmem:[%s965_s1 + $0x18] sm:$0xff] }
   0x8   :  { %993 = vst [vmem:[#allocation10_spill] sm:$0xff] %v673_v10  ;;  %v45_v25 = vrot.slane %v44_v17, 4  ;;  %v63_v26 = vadd.f32 %v691_v16, %v60_v19  ;;  %v733_v34 = vld [vmem:[%s966_s2 + $0x10] sm:$0xff]  ;;  %v763_v50 = vld [vmem:[%s965_s1 + $0x60] sm:$0xff]  ;;  %v769_v54 = vld [vmem:[%s966_s2 + $0x18] sm:$0xff] }
   0x9   :  { %994 = vst [vmem:[#allocation11_spill] sm:$0xff] %v678_v11  ;;  %v35_v21 = vrot.slane %v34_v14, 4  ;;  %v57_v22 = vadd.f32 %v684_v13, %v54_v15  ;;  %v776_v60 = vld [vmem:[%s966_s2 + $0x60] sm:$0xff]  ;;  %v788_v15 = vld [vmem:[%s964_s0 + $0x58] sm:$0xff] }
   0xa   :  { %995 = vst [vmem:[#allocation12_spill] sm:$0xff] %v684_v13  ;;  %v46_v32 = vadd.f32 %v45_v25, %v44_v17  ;;  %v76_v33 = vmul.f32 %v709_v23, %v63_v26  ;;  %v92_v35 = vmul.f32 %v714_v24, %v63_v26  ;;  %v782_v3 = vld [vmem:[%s964_s0 + $0x20] sm:$0xff] }
   0xb   :  { %996 = vst [vmem:[#allocation13_spill] sm:$0xff] %v691_v16  ;;  %v36_v28 = vadd.f32 %v35_v21, %v34_v14  ;;  %v66_v29 = vmul.f32 %v697_v18, %v57_v22  ;;  %v86_v30 = vmul.f32 %v703_v20, %v57_v22  ;;  %v794_v25 = vld [vmem:[%s965_s1 + $0x20] sm:$0xff] }
   0xc   :  { %997 = vst [vmem:[#allocation14_spill] sm:$0xff] %v697_v18  ;;  %v47_v42 = vrot.slane %v46_v32, 2  ;;  %v77_v43 = vrot.slane %v76_v33, 4  ;;  %v95_v44 = vadd.f32 %v727_v31, %v92_v35  ;;  %v799_v26 = vld [vmem:[%s966_s2 + $0x20] sm:$0xff] }
   0xd   :  { %998 = vst [vmem:[#allocation15_spill] sm:$0xff] %v709_v23  ;;  %v37_v37 = vrot.slane %v36_v28, 2  ;;  %v67_v38 = vrot.slane %v66_v29, 4  ;;  %v89_v39 = vadd.f32 %v720_v27, %v86_v30  ;;  %v551_v6 = vld [vmem:[%s965_s1 + $0x40] sm:$0xff] }
   0xe   :  { %999 = vst [vmem:[#allocation16_spill] sm:$0xff] %v720_v27  ;;  %v48_v51 = vadd.f32 %v47_v42, %v46_v32  ;;  %v78_v52 = vadd.f32 %v77_v43, %v76_v33  ;;  %v108_v53 = vmul.f32 %v745_v40, %v95_v44  ;;  %v124_v55 = vmul.f32 %v750_v41, %v95_v44  ;;  %v805_v33 = vld [vmem:[%s965_s1 + $0x58] sm:$0xff]  ;;  %v811_v42 = vld [vmem:[%s964_s0 + $0x28] sm:$0xff] }
   0xf   :  { %1000 = vst [vmem:[#allocation17_spill] sm:$0xff] %v727_v31  ;;  %v38_v46 = vadd.f32 %v37_v37, %v36_v28  ;;  %v68_v47 = vadd.f32 %v67_v38, %v66_v29  ;;  %v98_v48 = vmul.f32 %v733_v34, %v89_v39  ;;  %v118_v49 = vmul.f32 %v739_v36, %v89_v39 }
  0x10   :  { %1001 = vst [vmem:[#allocation18_spill] sm:$0xff] %v733_v34  ;;  %v49_v61 = vrot.slane %v48_v51, 1  ;;  %v79_v62 = vrot.slane %v78_v52, 2  ;;  %v109_v63 = vrot.slane %v108_v53, 4  ;;  %v127_v0 = vadd.f32 %v763_v50, %v124_v55 }
  0x11   :  { %1002 = vst [vmem:[#allocation19_spill] sm:$0xff] %v745_v40  ;;  %v39_v56 = vrot.slane %v38_v46, 1  ;;  %v69_v57 = vrot.slane %v68_v47, 2  ;;  %v99_v58 = vrot.slane %v98_v48, 4  ;;  %v121_v59 = vadd.f32 %v756_v45, %v118_v49  ;;  %v822_v49 = vld [vmem:[%s964_s0 + $0x50] sm:$0xff] }
  0x12   :  { %v50_v17 = vadd.f32 %v49_v61, %v48_v51  ;;  %v80_v19 = vadd.f32 %v79_v62, %v78_v52  ;;  %v110_v21 = vadd.f32 %v109_v63, %v108_v53  ;;  %v140_v22 = vmul.f32 %v776_v60, %v127_v0  ;;  %v835_v62 = vld [vmem:[%s965_s1 + $0x50] sm:$0xff] }
  0x13   :  { %v40_v7 = vadd.f32 %v39_v56, %v38_v46  ;;  %v70_v9 = vadd.f32 %v69_v57, %v68_v47  ;;  %v100_v12 = vadd.f32 %v99_v58, %v98_v48  ;;  %v130_v14 = vmul.f32 %v769_v54, %v121_v59  ;;  %v817_v48 = vld [vmem:[%s966_s2 + $0x58] sm:$0xff]  ;;  %v828_v56 = vld [vmem:[%s965_s1 + $0x28] sm:$0xff] }
  0x14   :  { %v150_v32 = vmul.f32 %v782_v3, %v121_v59  ;;  %51 = vst [vmem:[#allocation3 + $0xf] sm:$0x1] %v50_v17  ;;  %v81_v35 = vrot.slane %v80_v19, 1  ;;  %v111_v37 = vrot.slane %v110_v21, 2  ;;  %v141_v38 = vrot.slane %v140_v22, 4 }
  0x15   :  { %41 = vst [vmem:[#allocation2] sm:$0x1] %v40_v7  ;;  %v71_v28 = vrot.slane %v70_v9, 1  ;;  %v101_v29 = vrot.slane %v100_v12, 2  ;;  %v131_v30 = vrot.slane %v130_v14, 4  ;;  %v156_v39 = vmul.f32 %v788_v15, %v127_v0 }
  0x16   :  { %v153_v47 = vadd.f32 %v794_v25, %v150_v32  ;;  %v82_v51 = vadd.f32 %v81_v35, %v80_v19  ;;  %v112_v52 = vadd.f32 %v111_v37, %v110_v21  ;;  %v142_v53 = vadd.f32 %v141_v38, %v140_v22  ;;  %v864_v38 = vld [vmem:[%s965_s1 + $0x30] sm:$0xff] }
  0x17   :  { %v72_v43 = vadd.f32 %v71_v28, %v70_v9  ;;  %v102_v44 = vadd.f32 %v101_v29, %v100_v12  ;;  %v132_v46 = vadd.f32 %v131_v30, %v130_v14  ;;  %v159_v55 = vadd.f32 %v805_v33, %v156_v39  ;;  %v841_v9 = vld [vmem:[%s966_s2 + $0x28] sm:$0xff]  ;;  %v847_v14 = vld [vmem:[%s964_s0 + $0x30] sm:$0xff] }
  0x18   :  { %v162_v59 = vmul.f32 %v799_v26, %v153_v47  ;;  %v182_v61 = vmul.f32 %v811_v42, %v153_v47  ;;  %83 = vst [vmem:[#allocation3 + $0xe] sm:$0x1] %v82_v51  ;;  %v113_v63 = vrot.slane %v112_v52, 1  ;;  %v143_v0 = vrot.slane %v142_v53, 2  ;;  %v853_v28 = vld [vmem:[%s966_s2 + $0x50] sm:$0xff]  ;;  %v858_v29 = vld [vmem:[%s964_s0 + $0x48] sm:$0xff] }
  0x19   :  { %73 = vst [vmem:[#allocation2 + $0x1] sm:$0x1] %v72_v43  ;;  %v103_v57 = vrot.slane %v102_v44, 1  ;;  %v133_v58 = vrot.slane %v132_v46, 2  ;;  %v172_v7 = vmul.f32 %v817_v48, %v159_v55  ;;  %v188_v12 = vmul.f32 %v822_v49, %v159_v55  ;;  %v871_v47 = vld [vmem:[%s965_s1 + $0x48] sm:$0xff]  ;;  %v877_v55 = vld [vmem:[%s966_s2 + $0x30] sm:$0xff] }
  0x1a   :  { %v163_v21 = vrot.slane %v162_v59, 4  ;;  %v185_v22 = vadd.f32 %v828_v56, %v182_v61  ;;  %v114_v30 = vadd.f32 %v113_v63, %v112_v52  ;;  %v144_v32 = vadd.f32 %v143_v0, %v142_v53 }
  0x1b   :  { %v104_v17 = vadd.f32 %v103_v57, %v102_v44  ;;  %v134_v19 = vadd.f32 %v133_v58, %v132_v46  ;;  %v173_v35 = vrot.slane %v172_v7, 4  ;;  %v191_v37 = vadd.f32 %v835_v62, %v188_v12  ;;  %v548_v58 = vld [vmem:[%s964_s0 + $0x38] sm:$0xff]  ;;  %v550_v12 = vld [vmem:[%s964_s0 + $0x40] sm:$0xff] }
  0x1c   :  { %v164_v43 = vadd.f32 %v163_v21, %v162_v59  ;;  %v194_v44 = vmul.f32 %v841_v9, %v185_v22  ;;  %v214_v46 = vmul.f32 %v847_v14, %v185_v22  ;;  %115 = vst [vmem:[#allocation3 + $0xd] sm:$0x1] %v114_v30  ;;  %v145_v51 = vrot.slane %v144_v32, 1 }
  0x1d   :  { %105 = vst [vmem:[#allocation2 + $0x2] sm:$0x1] %v104_v17  ;;  %v135_v39 = vrot.slane %v134_v19, 1  ;;  %v174_v52 = vadd.f32 %v173_v35, %v172_v7  ;;  %v204_v53 = vmul.f32 %v853_v28, %v191_v37  ;;  %v220_v57 = vmul.f32 %v858_v29, %v191_v37  ;;  %v887_v7 = vld [vmem:[%s966_s2 + $0x48] sm:$0xff] }
  0x1e   :  { %v165_v61 = vrot.slane %v164_v43, 2  ;;  %v195_v63 = vrot.slane %v194_v44, 4  ;;  %v217_v0 = vadd.f32 %v864_v38, %v214_v46  ;;  %v146_v17 = vadd.f32 %v145_v51, %v144_v32 }
  0x1f   :  { %v136_v59 = vadd.f32 %v135_v39, %v134_v19  ;;  %v175_v21 = vrot.slane %v174_v52, 2  ;;  %v205_v22 = vrot.slane %v204_v53, 4  ;;  %v223_v30 = vadd.f32 %v871_v47, %v220_v57  ;;  %v549_v19 = vld [vmem:[%s965_s1 + $0x38] sm:$0xff] }
  0x20   :  { %v166_v35 = vadd.f32 %v165_v61, %v164_v43  ;;  %v196_v37 = vadd.f32 %v195_v63, %v194_v44  ;;  %v226_v39 = vmul.f32 %v877_v55, %v217_v0  ;;  %v246_v46 = vmul.f32 %v548_v58, %v217_v0  ;;  %147 = vst [vmem:[#allocation3 + $0xc] sm:$0x1] %v146_v17  ;;  %v552_v57 = vld [vmem:[%s966_s2 + $0x38] sm:$0xff]  ;;  %v553_v63 = vld [vmem:[%s966_s2 + $0x40] sm:$0xff] }
  0x21   :  { %137 = vst [vmem:[#allocation2 + $0x3] sm:$0x1] %v136_v59  ;;  %v176_v32 = vadd.f32 %v175_v21, %v174_v52  ;;  %v206_v51 = vadd.f32 %v205_v22, %v204_v53  ;;  %v236_v10 = vmul.f32 %v887_v7, %v223_v30  ;;  %v252_v2 = vmul.f32 %v550_v12, %v223_v30 }
  0x22   :  { %v167_v59 = vrot.slane %v166_v35, 1  ;;  %v197_v43 = vrot.slane %v196_v37, 2  ;;  %v227_v44 = vrot.slane %v226_v39, 4  ;;  %v249_v61 = vadd.f32 %v549_v19, %v246_v46 }
  0x23   :  { %v177_v0 = vrot.slane %v176_v32, 1  ;;  %v207_v5 = vrot.slane %v206_v51, 2  ;;  %v237_v17 = vrot.slane %v236_v10, 4  ;;  %v255_v52 = vadd.f32 %v551_v6, %v252_v2 }
  0x24   :  { %v168_v53 = vadd.f32 %v167_v59, %v166_v35  ;;  %v198_v21 = vadd.f32 %v197_v43, %v196_v37  ;;  %v228_v22 = vadd.f32 %v227_v44, %v226_v39  ;;  %v258_v1 = vmul.f32 %v552_v57, %v249_v61 }
  0x25   :  { %v178_v18 = vadd.f32 %v177_v0, %v176_v32  ;;  %v208_v4 = vadd.f32 %v207_v5, %v206_v51  ;;  %v238_v23 = vadd.f32 %v237_v17, %v236_v10  ;;  %v268_v30 = vmul.f32 %v553_v63, %v255_v52 }
  0x26   :  { %169 = vst [vmem:[#allocation2 + $0x4] sm:$0x1] %v168_v53  ;;  %v199_v13 = vrot.slane %v198_v21, 1  ;;  %v229_v16 = vrot.slane %v228_v22, 2  ;;  %v259_v46 = vrot.slane %v258_v1, 4  ;;  %v277_v8 = vmul.f32 %v550_v12, %v249_v61 }
  0x27   :  { %179 = vst [vmem:[#allocation3 + $0xb] sm:$0x1] %v178_v18  ;;  %v209_v34 = vrot.slane %v208_v4, 1  ;;  %v239_v11 = vrot.slane %v238_v23, 2  ;;  %v269_v40 = vrot.slane %v268_v30, 4  ;;  %v281_v27 = vmul.f32 %v548_v58, %v255_v52 }
  0x28   :  { %v200_v31 = vadd.f32 %v199_v13, %v198_v21  ;;  %v230_v2 = vadd.f32 %v229_v16, %v228_v22  ;;  %v260_v35 = vadd.f32 %v259_v46, %v258_v1  ;;  %v279_v37 = vadd.f32 %v551_v6, %v277_v8 }
  0x29   :  { %v210_v39 = vadd.f32 %v209_v34, %v208_v4  ;;  %v240_v59 = vadd.f32 %v239_v11, %v238_v23  ;;  %v270_v32 = vadd.f32 %v269_v40, %v268_v30  ;;  %v283_v5 = vadd.f32 %v549_v19, %v281_v27 }
  0x2a   :  { %201 = vst [vmem:[#allocation2 + $0x5] sm:$0x1] %v200_v31  ;;  %v231_v10 = vrot.slane %v230_v2, 1  ;;  %v261_v51 = vrot.slane %v260_v35, 2  ;;  %v285_v43 = vmul.f32 %v553_v63, %v279_v37  ;;  %v303_v44 = vmul.f32 %v858_v29, %v279_v37 }
  0x2b   :  { %211 = vst [vmem:[#allocation3 + $0xa] sm:$0x1] %v210_v39  ;;  %v241_v18 = vrot.slane %v240_v59, 1  ;;  %v271_v12 = vrot.slane %v270_v32, 2  ;;  %v294_v61 = vmul.f32 %v552_v57, %v283_v5  ;;  %v307_v58 = vmul.f32 %v847_v14, %v283_v5 }
  0x2c   :  { %v232_v13 = vadd.f32 %v231_v10, %v230_v2  ;;  %v262_v16 = vadd.f32 %v261_v51, %v260_v35  ;;  %v286_v1 = vrot.slane %v285_v43, 4  ;;  %v305_v4 = vadd.f32 %v871_v47, %v303_v44 }
  0x2d   :  { %v242_v6 = vadd.f32 %v241_v18, %v240_v59  ;;  %v272_v8 = vadd.f32 %v271_v12, %v270_v32  ;;  %v295_v11 = vrot.slane %v294_v61, 4  ;;  %v309_v23 = vadd.f32 %v864_v38, %v307_v58 }
  0x2e   :  { %233 = vst [vmem:[#allocation2 + $0x6] sm:$0x1] %v232_v13  ;;  %v263_v27 = vrot.slane %v262_v16, 1  ;;  %v287_v31 = vadd.f32 %v286_v1, %v285_v43  ;;  %v311_v34 = vmul.f32 %v887_v7, %v305_v4  ;;  %v329_v40 = vmul.f32 %v822_v49, %v305_v4 }
  0x2f   :  { %243 = vst [vmem:[#allocation3 + $0x9] sm:$0x1] %v242_v6  ;;  %v273_v29 = vrot.slane %v272_v8, 1  ;;  %v296_v14 = vadd.f32 %v295_v11, %v294_v61  ;;  %v320_v19 = vmul.f32 %v877_v55, %v309_v23  ;;  %v333_v57 = vmul.f32 %v811_v42, %v309_v23 }
  0x30   :  { %v264_v47 = vadd.f32 %v263_v27, %v262_v16  ;;  %v288_v63 = vrot.slane %v287_v31, 2  ;;  %v312_v0 = vrot.slane %v311_v34, 4  ;;  %v331_v17 = vadd.f32 %v835_v62, %v329_v40 }
  0x31   :  { %v274_v38 = vadd.f32 %v273_v29, %v272_v8  ;;  %v297_v52 = vrot.slane %v296_v14, 2  ;;  %v321_v53 = vrot.slane %v320_v19, 4  ;;  %v335_v21 = vadd.f32 %v828_v56, %v333_v57 }
  0x32   :  { %265 = vst [vmem:[#allocation2 + $0x7] sm:$0x1] %v264_v47  ;;  %v289_v7 = vadd.f32 %v288_v63, %v287_v31  ;;  %v313_v49 = vadd.f32 %v312_v0, %v311_v34  ;;  %v337_v22 = vmul.f32 %v853_v28, %v331_v17  ;;  %v355_v30 = vmul.f32 %v788_v15, %v331_v17  ;;  %v1003_v47 = vld [vmem:[#allocation17_spill] sm:$0xff] }
  0x33   :  { %275 = vst [vmem:[#allocation3 + $0x8] sm:$0x1] %v274_v38  ;;  %v298_v55 = vadd.f32 %v297_v52, %v296_v14  ;;  %v322_v42 = vadd.f32 %v321_v53, %v320_v19  ;;  %v346_v46 = vmul.f32 %v841_v9, %v335_v21  ;;  %v359_v2 = vmul.f32 %v782_v3, %v335_v21  ;;  %v1004_v38 = vld [vmem:[#allocation16_spill] sm:$0xff]  ;;  %v1005_v53 = vld [vmem:[#allocation19_spill] sm:$0xff] }
  0x34   :  { %v290_v62 = vrot.slane %v289_v7, 1  ;;  %v314_v35 = vrot.slane %v313_v49, 2  ;;  %v338_v37 = vrot.slane %v337_v22, 4  ;;  %v357_v39 = vadd.f32 %v805_v33, %v355_v30 }
  0x35   :  { %v299_v56 = vrot.slane %v298_v55, 1  ;;  %v323_v59 = vrot.slane %v322_v42, 2  ;;  %v347_v32 = vrot.slane %v346_v46, 4  ;;  %v361_v5 = vadd.f32 %v794_v25, %v359_v2 }
  0x36   :  { %v291_v28 = vadd.f32 %v290_v62, %v289_v7  ;;  %v315_v10 = vadd.f32 %v314_v35, %v313_v49  ;;  %v339_v15 = vadd.f32 %v338_v37, %v337_v22  ;;  %v363_v51 = vmul.f32 %v817_v48, %v357_v39  ;;  %v1006_v7 = vld [vmem:[#allocation11_spill] sm:$0xff]  ;;  %v1007_v22 = vld [vmem:[#allocation18_spill] sm:$0xff]  ;;  %v1009_v35 = vld [vmem:[#allocation13_spill] sm:$0xff] }
  0x37   :  { %v300_v43 = vadd.f32 %v299_v56, %v298_v55  ;;  %v324_v44 = vadd.f32 %v323_v59, %v322_v42  ;;  %v348_v9 = vadd.f32 %v347_v32, %v346_v46  ;;  %v372_v3 = vmul.f32 %v799_v26, %v361_v5  ;;  %v1008_v55 = vld [vmem:[#allocation9_spill] sm:$0xff]  ;;  %v1010_v32 = vld [vmem:[#allocation12_spill] sm:$0xff] }
  0x38   :  { %292 = vst [vmem:[#allocation2 + $0x8] sm:$0x1] %v291_v28  ;;  %v316_v18 = vrot.slane %v315_v10, 1  ;;  %v340_v12 = vrot.slane %v339_v15, 2  ;;  %v364_v61 = vrot.slane %v363_v51, 4  ;;  %v381_v33 = vmul.f32 %v750_v41, %v357_v39 }
  0x39   :  { %301 = vst [vmem:[#allocation3 + $0x7] sm:$0x1] %v300_v43  ;;  %v325_v58 = vrot.slane %v324_v44, 1  ;;  %v349_v13 = vrot.slane %v348_v9, 2  ;;  %v373_v25 = vrot.slane %v372_v3, 4  ;;  %v385_v16 = vmul.f32 %v739_v36, %v361_v5  ;;  %v1012_v43 = vld [vmem:[#allocation6_spill] sm:$0xff] }
  0x3a   :  { %v317_v1 = vadd.f32 %v316_v18, %v315_v10  ;;  %v341_v4 = vadd.f32 %v340_v12, %v339_v15  ;;  %v365_v48 = vadd.f32 %v364_v61, %v363_v51  ;;  %v383_v6 = vadd.f32 %v763_v50, %v381_v33  ;;  %v1011_v15 = vld [vmem:[#allocation15_spill] sm:$0xff]  ;;  %v1013_v18 = vld [vmem:[#allocation14_spill] sm:$0xff]  ;;  %v1014_v61 = vld [vmem:[#allocation4_spill] sm:$0xff] }
  0x3b   :  { %v326_v8 = vadd.f32 %v325_v58, %v324_v44  ;;  %v350_v11 = vadd.f32 %v349_v13, %v348_v9  ;;  %v374_v26 = vadd.f32 %v373_v25, %v372_v3  ;;  %v387_v23 = vadd.f32 %v756_v45, %v385_v16  ;;  %v1015_v16 = vld [vmem:[#allocation7_spill] sm:$0xff] }
  0x3c   :  { %318 = vst [vmem:[#allocation2 + $0x9] sm:$0x1] %v317_v1  ;;  %v342_v27 = vrot.slane %v341_v4, 1  ;;  %v366_v31 = vrot.slane %v365_v48, 2  ;;  %v389_v41 = vmul.f32 %v776_v60, %v383_v6  ;;  %v407_v34 = vmul.f32 %v714_v24, %v383_v6 }
  0x3d   :  { %327 = vst [vmem:[#allocation3 + $0x6] sm:$0x1] %v326_v8  ;;  %v351_v40 = vrot.slane %v350_v11, 1  ;;  %v375_v36 = vrot.slane %v374_v26, 2  ;;  %v398_v29 = vmul.f32 %v769_v54, %v387_v23  ;;  %v411_v14 = vmul.f32 %v703_v20, %v387_v23  ;;  %v1016_v8 = vld [vmem:[#allocation5_spill] sm:$0xff] }
  0x3e   :  { %v343_v50 = vadd.f32 %v342_v27, %v341_v4  ;;  %v367_v19 = vadd.f32 %v366_v31, %v365_v48  ;;  %v390_v57 = vrot.slane %v389_v41, 4  ;;  %v409_v63 = vadd.f32 %v1003_v47, %v407_v34  ;;  %v1017_v31 = vld [vmem:[#allocation10_spill] sm:$0xff] }
  0x3f   :  { %v352_v45 = vadd.f32 %v351_v40, %v350_v11  ;;  %v376_v0 = vadd.f32 %v375_v36, %v374_v26  ;;  %v399_v17 = vrot.slane %v398_v29, 4  ;;  %v413_v52 = vadd.f32 %v1004_v38, %v411_v14 }
  0x40   :  { %344 = vst [vmem:[#allocation2 + $0xa] sm:$0x1] %v343_v50  ;;  %v368_v60 = vrot.slane %v367_v19, 1  ;;  %v391_v24 = vadd.f32 %v390_v57, %v389_v41  ;;  %v415_v21 = vmul.f32 %v1005_v53, %v409_v63  ;;  %v433_v49 = vmul.f32 %v1006_v7, %v409_v63 }
  0x41   :  { %353 = vst [vmem:[#allocation3 + $0x5] sm:$0x1] %v352_v45  ;;  %v377_v54 = vrot.slane %v376_v0, 1  ;;  %v400_v20 = vadd.f32 %v399_v17, %v398_v29  ;;  %v424_v30 = vmul.f32 %v1007_v22, %v413_v52  ;;  %v437_v42 = vmul.f32 %v1008_v55, %v413_v52  ;;  %v1018_v29 = vld [vmem:[#allocation8_spill] sm:$0xff] }
  0x42   :  { %v369_v46 = vadd.f32 %v368_v60, %v367_v19  ;;  %v392_v2 = vrot.slane %v391_v24, 2  ;;  %v416_v62 = vrot.slane %v415_v21, 4  ;;  %v435_v37 = vadd.f32 %v1009_v35, %v433_v49 }
  0x43   :  { %v378_v39 = vadd.f32 %v377_v54, %v376_v0  ;;  %v401_v56 = vrot.slane %v400_v20, 2  ;;  %v425_v59 = vrot.slane %v424_v30, 4  ;;  %v439_v5 = vadd.f32 %v1010_v32, %v437_v42 }
  0x44   :  { %370 = vst [vmem:[#allocation2 + $0xb] sm:$0x1] %v369_v46  ;;  %v393_v28 = vadd.f32 %v392_v2, %v391_v24  ;;  %v417_v10 = vadd.f32 %v416_v62, %v415_v21  ;;  %v441_v51 = vmul.f32 %v1011_v15, %v435_v37  ;;  %v459_v44 = vmul.f32 %v1012_v43, %v435_v37  ;;  %v487_v37 = vld [vmem:[#allocation3 + $0x8] sm:$0xff] }
  0x45   :  { %379 = vst [vmem:[#allocation3 + $0x4] sm:$0x1] %v378_v39  ;;  %v402_v9 = vadd.f32 %v401_v56, %v400_v20  ;;  %v426_v3 = vadd.f32 %v425_v59, %v424_v30  ;;  %v450_v12 = vmul.f32 %v1013_v18, %v439_v5  ;;  %v463_v33 = vmul.f32 %v439_v5, %v1014_v61  ;;  %v484_v39 = vld [vmem:[#allocation2] sm:$0xff] }
  0x46   :  { %v394_v58 = vrot.slane %v393_v28, 1  ;;  %v418_v13 = vrot.slane %v417_v10, 2  ;;  %v442_v25 = vrot.slane %v441_v51, 4  ;;  %v461_v1 = vadd.f32 %v1015_v16, %v459_v44 }
  0x47   :  { %v403_v4 = vrot.slane %v402_v9, 1  ;;  %v427_v48 = vrot.slane %v426_v3, 2  ;;  %v451_v6 = vrot.slane %v450_v12, 4  ;;  %v465_v11 = vadd.f32 %v463_v33, %v1016_v8 }
  0x48   :  { %v395_v26 = vadd.f32 %v394_v58, %v393_v28  ;;  %v419_v23 = vadd.f32 %v418_v13, %v417_v10  ;;  %v443_v27 = vadd.f32 %v442_v25, %v441_v51  ;;  %v467_v41 = vmul.f32 %v1017_v31, %v461_v1  ;;  %v493_v28 = vld [vmem:[%s969_s3 + $0x8] sm:$0xff]  ;;  %v492_v10 = vld [vmem:[%s969_s3] sm:$0xff] }
  0x49   :  { %v404_v34 = vadd.f32 %v403_v4, %v402_v9  ;;  %v428_v40 = vadd.f32 %v427_v48, %v426_v3  ;;  %v452_v36 = vadd.f32 %v451_v6, %v450_v12  ;;  %v476_v14 = vmul.f32 %v465_v11, %v1018_v29 }
  0x4a   :  { %396 = vst [vmem:[#allocation2 + $0xc] sm:$0x1] %v395_v26  ;;  %v420_v50 = vrot.slane %v419_v23, 1  ;;  %v444_v19 = vrot.slane %v443_v27, 2  ;;  %v468_v57 = vrot.slane %v467_v41, 4  ;;  %v498_v47 = vadd.f32 %v465_v11, %v461_v1 }
  0x4b   :  { %405 = vst [vmem:[#allocation3 + $0x3] sm:$0x1] %v404_v34  ;;  %v429_v63 = vrot.slane %v428_v40, 1  ;;  %v453_v45 = vrot.slane %v452_v36, 2  ;;  %v477_v0 = vrot.slane %v476_v14, 4 }
  0x4c   :  { %v421_v17 = vadd.f32 %v420_v50, %v419_v23  ;;  %v445_v38 = vadd.f32 %v444_v19, %v443_v27  ;;  %v469_v52 = vadd.f32 %v468_v57, %v467_v41  ;;  %v499_v60 = vmul.f32 0.5, %v498_v47 }
  0x4d   :  { %v430_v24 = vadd.f32 %v429_v63, %v428_v40  ;;  %v454_v53 = vadd.f32 %v453_v45, %v452_v36  ;;  %v478_v21 = vadd.f32 %v477_v0, %v476_v14 }
  0x4e   :  { %422 = vst [vmem:[#allocation2 + $0xd] sm:$0x1] %v421_v17  ;;  %v446_v7 = vrot.slane %v445_v38, 1  ;;  %v470_v49 = vrot.slane %v469_v52, 2 }
  0x4f   :  { %431 = vst [vmem:[#allocation3 + $0x2] sm:$0x1] %v430_v24  ;;  %v455_v54 = vrot.slane %v454_v53, 1  ;;  %v479_v20 = vrot.slane %v478_v21, 2 }
  0x50   :  { %v447_v22 = vadd.f32 %v446_v7, %v445_v38  ;;  %v471_v30 = vadd.f32 %v470_v49, %v469_v52  ;;  %500 = vst [vmem:[%s968_s6] sm:$0xff] %v499_v60 }
  0x51   :  { %v456_v55 = vadd.f32 %v455_v54, %v454_v53  ;;  %v480_v42 = vadd.f32 %v479_v20, %v478_v21 }
  0x52   :  { %448 = vst [vmem:[#allocation2 + $0xe] sm:$0x1] %v447_v22  ;;  %v472_v46 = vrot.slane %v471_v30, 1 }
  0x53   :  { %457 = vst [vmem:[#allocation3 + $0x1] sm:$0x1] %v456_v55  ;;  %v481_v2 = vrot.slane %v480_v42, 1 }
  0x54   :  { %v473_v62 = vadd.f32 %v472_v46, %v471_v30 }
  0x55   :  { %v482_v35 = vadd.f32 %v481_v2, %v480_v42 }
  0x56   :  { %474 = vst [vmem:[#allocation2 + $0xf] sm:$0x1] %v473_v62 }
  0x57   :  { %483 = vst [vmem:[#allocation3] sm:$0x1] %v482_v35 }
  0x5d   :  { %v485_v56 = vld [vmem:[#allocation2 + $0x8] sm:$0xff] }
  0x5e   :  { %v486_v59 = vld [vmem:[#allocation3] sm:$0xff]  ;;  %v489_v32 = vadd.f32 %v487_v37, %v485_v56 }
  0x5f   :  { %v488_v5 = vadd.f32 %v486_v59, %v484_v39 }
  0x60   :  { %v491_v15 = vmul.f32 0.5, %v489_v32 }
  0x61   :  { %v490_v51 = vmul.f32 0.5, %v488_v5 }
  0x62   :  { %v495_v43 = vadd.f32 %v493_v28, %v491_v15 }
  0x63   :  { %v494_v44 = vadd.f32 %v492_v10, %v490_v51 }
  0x64   :  { %497 = vst [vmem:[%s970_s5 + $0x8] sm:$0xff] %v495_v43 }
  0x65   :  { %496 = vst [vmem:[%s970_s5] sm:$0xff] %v494_v44 }

</bundles_post_ra>
